<compile_context>
chip_gen: v6e
topology: v6e:2x2x1
jax: 0.10.0
libtpu: 0.0.40
codegen_flags: <defaults>
</compile_context>

<pallas_src>
import functools
import numpy as np

import jax
import jax.numpy as jnp
from jax.experimental import pallas as pl
from jax.experimental.pallas import tpu as pltpu

_LANE = 128
_SUBLANE = 16  # multiple of 8 (f32 tiles) and 16 (bf16 sublane packing)


def _round_up(x, m):
    return ((x + m - 1) // m) * m


def _posenc_kernel(x_ref, o_ref, *, base_freq, num_freqs, include_input,
                   use_double_angle):
    # x_ref: (block_rows, 128) flat chunk of x (row-major over (batch, d_in)).
    # o_ref: (num_ch, block_rows, 128) channel-major output, lane/sublane dense.
    x = x_ref[...]
    ch = 0
    if include_input:
        o_ref[ch, :, :] = x.astype(o_ref.dtype)
        ch += 1

    if use_double_angle:
        # 2 transcendentals total; each octave costs ~3 VPU FMAs.
        a = x * jnp.float32(base_freq)
        s = jnp.sin(a)
        c = jnp.cos(a)
        for k in range(num_freqs):
            o_ref[ch, :, :] = s.astype(o_ref.dtype)
            o_ref[ch + 1, :, :] = c.astype(o_ref.dtype)
            ch += 2
            if k + 1 < num_freqs:
                # sin(2a) = 2 sin a cos a ; cos(2a) = 1 - 2 sin^2 a
                s, c = 2.0 * s * c, 1.0 - 2.0 * s * s
    else:
        # Exact path: one mul feeding sin+cos per frequency.
        for k in range(num_freqs):
            arg = x * jnp.float32(base_freq * (2.0 ** k))
            o_ref[ch, :, :] = jnp.sin(arg).astype(o_ref.dtype)
            o_ref[ch + 1, :, :] = jnp.cos(arg).astype(o_ref.dtype)
            ch += 2


def positional_encoding(x, *, num_freqs=6, freq_factor=np.pi, include_input=True,
                        block_rows=1024, out_dtype=jnp.float32,
                        layout="torch", use_double_angle=True):
    """NeRF positional encoding via a Pallas TPU kernel.

    x: (batch, d_in) float-ish
    layout="torch":          (batch, d_out) exactly like the PyTorch module.
    layout="channel_major":  (num_ch, batch, d_in) kernel-native layout with no
                             post-kernel transpose; fold the permutation into
                             the consumer's first weight matrix for free.
    out_dtype=jnp.bfloat16 halves HBM write traffic (perf option; default f32
    matches the module's precision).
    """
    batch, d_in = x.shape
    num_ch = 2 * num_freqs + (1 if include_input else 0)
    d_out = num_ch * d_in

    # ---- flatten to (rows, 128); pad only when the flat size is unaligned ----
    n = batch * d_in
    n128 = _round_up(n, _LANE)
    xf = x.reshape(-1).astype(jnp.float32)
    if n128 > n:
        xf = jnp.pad(xf, (0, n128 - n))          # only on unaligned batches
    rows = n128 // _LANE
    x2 = xf.reshape(rows, _LANE)

    # ---- block size selection ------------------------------------------------
    # <=1024 rows keeps double-buffered f32 output ~14 MiB (v7x 64 MiB VMEM safe);
    # cap at ~half the rows so grid_steps >= 2 and the "parallel" axis shards
    # across v7x's two TensorCores; keep a multiple of 16 sublanes.
    br = max(_SUBLANE, _round_up(min(block_rows, 1024), _SUBLANE))
    half = max(_SUBLANE, _round_up(pl.cdiv(rows, 2), _SUBLANE))
    br = min(br, half)
    if br >= rows:
        br = rows                                # single full-extent block
    grid_steps = pl.cdiv(rows, br)               # ragged final block is masked

    kernel = functools.partial(
        _posenc_kernel,
        base_freq=float(freq_factor),
        num_freqs=int(num_freqs),
        include_input=include_input,
        use_double_angle=use_double_angle,
    )

    out_cm = pl.pallas_call(
        kernel,
        out_shape=jax.ShapeDtypeStruct((num_ch, rows, _LANE), out_dtype),
        grid_spec=pltpu.PrefetchScalarGridSpec(
            num_scalar_prefetch=0,
            grid=(grid_steps,),
            in_specs=[pl.BlockSpec((br, _LANE), lambda i: (i, 0))],
            out_specs=pl.BlockSpec((num_ch, br, _LANE), lambda i: (0, i, 0)),
        ),
        compiler_params=pltpu.CompilerParams(
            dimension_semantics=("parallel",)),
    )(x2)

    # ---- layout plumbing -------------------------------------------------------
    out_cm = out_cm.reshape(num_ch, rows * _LANE)
    if rows * _LANE > n:
        out_cm = out_cm[:, :n]                   # drop lane-pad tail (fused)
    out_cm = out_cm.reshape(num_ch, batch, d_in)

    if layout == "channel_major":
        return out_cm                            # zero-relayout fast path

    # torch layout: one XLA transpose (the dominant non-kernel cost; use
    # layout="channel_major" or out_dtype=bfloat16 to reduce/avoid it).
    return jnp.transpose(out_cm, (1, 0, 2)).reshape(batch, d_out)


def positional_encoding_ref(x, *, num_freqs=6, freq_factor=np.pi,
                            include_input=True):
    """Pure-JAX reference matching the PyTorch forward exactly."""
    base_freqs = freq_factor * (2.0 ** np.arange(num_freqs))
    freqs = jnp.asarray(np.repeat(base_freqs, 2), jnp.float32)[None, :, None]
    phases = np.zeros(2 * num_freqs, dtype=np.float32)
    phases[1::2] = np.pi * 0.5
    phases = jnp.asarray(phases)[None, :, None]

    embed = jnp.repeat(x[:, None, :], 2 * num_freqs, axis=1)   # (B, 2F, d_in)
    embed = jnp.sin(phases + embed * freqs)
    embed = embed.reshape(x.shape[0], -1)
    if include_input:
        embed = jnp.concatenate([x, embed], axis=-1)
    return embed


if __name__ == "__main__":
    key = jax.random.PRNGKey(0)
    d_in, num_freqs = 3, 6
    k1, k2 = jax.random.split(key)

    # Small but representative: 4096*3 = 12288 flat elements -> rows=96,
    # block_rows=48, grid=(2,) (exercises the multi-step / v7x-sharding path)
    # with zero pad copies.  NOTE: real perf tuning should be benchmarked at
    # NeRF scale (>=1e6 flat elements) where the roofline analysis applies.
    x = jax.random.uniform(k1, (4096, d_in), dtype=jnp.float32,
                           minval=-1.0, maxval=1.0)
    out = jax.block_until_ready(
        positional_encoding(x, num_freqs=num_freqs, freq_factor=np.pi,
                            include_input=True))
    ref = positional_encoding_ref(x, num_freqs=num_freqs, freq_factor=np.pi,
                                  include_input=True)
    # Double-angle recurrence compounds ~2x error per octave on top of the
    # hardware sin/cos error (~5e-7) -> worst case ~1e-4 at the top octave.
    np.testing.assert_allclose(np.asarray(out), np.asarray(ref),
                               rtol=0.0, atol=5e-4)
    assert out.shape == (4096, 2 * num_freqs * d_in + d_in)

    # Unaligned batch exercises the padded-tail path; exact sin/cos per
    # frequency (use_double_angle=False) validated at the tight tolerance.
    x2 = jax.random.uniform(k2, (257, d_in), dtype=jnp.float32,
                            minval=-1.0, maxval=1.0)
    out2 = jax.block_until_ready(
        positional_encoding(x2, num_freqs=num_freqs, freq_factor=np.pi,
                            include_input=True, use_double_angle=False))
    ref2 = positional_encoding_ref(x2, num_freqs=num_freqs, freq_factor=np.pi,
                                   include_input=True)
    np.testing.assert_allclose(np.asarray(out2), np.asarray(ref2),
                               rtol=2e-4, atol=2e-4)
    assert out2.shape == (257, 2 * num_freqs * d_in + d_in)

    print("KERNEL_OK")
</pallas_src>

<mosaic_0001>
module attributes {stable_mosaic.version = 11 : i64} {
  func.func @_posenc_kernel(%arg0: i32, %arg1: memref<48x128xf32, #tpu.memory_space<vmem>>, %arg2: memref<13x48x128xf32, #tpu.memory_space<vmem>>) attributes {dimension_semantics = [#tpu.dimension_semantics<parallel>], iteration_bounds = array<i64: 2>, scalar_prefetch = 0 : i64, scratch_operands = 0 : i64, tpu.core_type = #tpu.core_type<tc>, window_params = [{transform_indices = @transform_0, window_bounds = array<i64: 48, 128>}, {transform_indices = @transform_1, window_bounds = array<i64: 13, 48, 128>}]} {
    %c0 = arith.constant 0 : index
    %c0_0 = arith.constant 0 : index
    %0 = vector.load %arg1[%c0, %c0_0] : memref<48x128xf32, #tpu.memory_space<vmem>>, vector<48x128xf32>
    %c0_1 = arith.constant 0 : index
    %c0_2 = arith.constant 0 : index
    %c0_3 = arith.constant 0 : index
    %1 = vector.load %arg2[%c0_1, %c0_2, %c0_3] : memref<13x48x128xf32, #tpu.memory_space<vmem>>, vector<1x48x128xf32>
    %2 = vector.shape_cast %1 : vector<1x48x128xf32> to vector<48x128xf32>
    %3 = vector.shape_cast %0 : vector<48x128xf32> to vector<1x48x128xf32>
    tpu.vector_store %arg2[%c0_1, %c0_2, %c0_3], %3 {strides = array<i32>} : memref<13x48x128xf32, #tpu.memory_space<vmem>>, vector<1x48x128xf32>,
    %cst = arith.constant 3.14159274 : f32
    %4 = vector.broadcast %cst : f32 to vector<48x128xf32>
    %5 = arith.mulf %0, %4 : vector<48x128xf32>
    %6 = math.sin %5 : vector<48x128xf32>
    %7 = math.cos %5 : vector<48x128xf32>
    %c1 = arith.constant 1 : index
    %c0_4 = arith.constant 0 : index
    %c0_5 = arith.constant 0 : index
    %8 = vector.load %arg2[%c1, %c0_4, %c0_5] : memref<13x48x128xf32, #tpu.memory_space<vmem>>, vector<1x48x128xf32>
    %9 = vector.shape_cast %8 : vector<1x48x128xf32> to vector<48x128xf32>
    %10 = vector.shape_cast %6 : vector<48x128xf32> to vector<1x48x128xf32>
    tpu.vector_store %arg2[%c1, %c0_4, %c0_5], %10 {strides = array<i32>} : memref<13x48x128xf32, #tpu.memory_space<vmem>>, vector<1x48x128xf32>,
    %c2 = arith.constant 2 : index
    %c0_6 = arith.constant 0 : index
    %c0_7 = arith.constant 0 : index
    %11 = vector.load %arg2[%c2, %c0_6, %c0_7] : memref<13x48x128xf32, #tpu.memory_space<vmem>>, vector<1x48x128xf32>
    %12 = vector.shape_cast %11 : vector<1x48x128xf32> to vector<48x128xf32>
    %13 = vector.shape_cast %7 : vector<48x128xf32> to vector<1x48x128xf32>
    tpu.vector_store %arg2[%c2, %c0_6, %c0_7], %13 {strides = array<i32>} : memref<13x48x128xf32, #tpu.memory_space<vmem>>, vector<1x48x128xf32>,
    %cst_8 = arith.constant 2.000000e+00 : f32
    %14 = vector.broadcast %cst_8 : f32 to vector<48x128xf32>
    %15 = arith.mulf %14, %6 : vector<48x128xf32>
    %16 = arith.mulf %15, %7 : vector<48x128xf32>
    %cst_9 = arith.constant 2.000000e+00 : f32
    %17 = vector.broadcast %cst_9 : f32 to vector<48x128xf32>
    %18 = arith.mulf %17, %6 : vector<48x128xf32>
    %19 = arith.mulf %18, %6 : vector<48x128xf32>
    %cst_10 = arith.constant 1.000000e+00 : f32
    %20 = vector.broadcast %cst_10 : f32 to vector<48x128xf32>
    %21 = arith.subf %20, %19 : vector<48x128xf32>
    %c3 = arith.constant 3 : index
    %c0_11 = arith.constant 0 : index
    %c0_12 = arith.constant 0 : index
    %22 = vector.load %arg2[%c3, %c0_11, %c0_12] : memref<13x48x128xf32, #tpu.memory_space<vmem>>, vector<1x48x128xf32>
    %23 = vector.shape_cast %22 : vector<1x48x128xf32> to vector<48x128xf32>
    %24 = vector.shape_cast %16 : vector<48x128xf32> to vector<1x48x128xf32>
    tpu.vector_store %arg2[%c3, %c0_11, %c0_12], %24 {strides = array<i32>} : memref<13x48x128xf32, #tpu.memory_space<vmem>>, vector<1x48x128xf32>,
    %c4 = arith.constant 4 : index
    %c0_13 = arith.constant 0 : index
    %c0_14 = arith.constant 0 : index
    %25 = vector.load %arg2[%c4, %c0_13, %c0_14] : memref<13x48x128xf32, #tpu.memory_space<vmem>>, vector<1x48x128xf32>
    %26 = vector.shape_cast %25 : vector<1x48x128xf32> to vector<48x128xf32>
    %27 = vector.shape_cast %21 : vector<48x128xf32> to vector<1x48x128xf32>
    tpu.vector_store %arg2[%c4, %c0_13, %c0_14], %27 {strides = array<i32>} : memref<13x48x128xf32, #tpu.memory_space<vmem>>, vector<1x48x128xf32>,
    %cst_15 = arith.constant 2.000000e+00 : f32
    %28 = vector.broadcast %cst_15 : f32 to vector<48x128xf32>
    %29 = arith.mulf %28, %16 : vector<48x128xf32>
    %30 = arith.mulf %29, %21 : vector<48x128xf32>
    %cst_16 = arith.constant 2.000000e+00 : f32
    %31 = vector.broadcast %cst_16 : f32 to vector<48x128xf32>
    %32 = arith.mulf %31, %16 : vector<48x128xf32>
    %33 = arith.mulf %32, %16 : vector<48x128xf32>
    %cst_17 = arith.constant 1.000000e+00 : f32
    %34 = vector.broadcast %cst_17 : f32 to vector<48x128xf32>
    %35 = arith.subf %34, %33 : vector<48x128xf32>
    %c5 = arith.constant 5 : index
    %c0_18 = arith.constant 0 : index
    %c0_19 = arith.constant 0 : index
    %36 = vector.load %arg2[%c5, %c0_18, %c0_19] : memref<13x48x128xf32, #tpu.memory_space<vmem>>, vector<1x48x128xf32>
    %37 = vector.shape_cast %36 : vector<1x48x128xf32> to vector<48x128xf32>
    %38 = vector.shape_cast %30 : vector<48x128xf32> to vector<1x48x128xf32>
    tpu.vector_store %arg2[%c5, %c0_18, %c0_19], %38 {strides = array<i32>} : memref<13x48x128xf32, #tpu.memory_space<vmem>>, vector<1x48x128xf32>,
    %c6 = arith.constant 6 : index
    %c0_20 = arith.constant 0 : index
    %c0_21 = arith.constant 0 : index
    %39 = vector.load %arg2[%c6, %c0_20, %c0_21] : memref<13x48x128xf32, #tpu.memory_space<vmem>>, vector<1x48x128xf32>
    %40 = vector.shape_cast %39 : vector<1x48x128xf32> to vector<48x128xf32>
    %41 = vector.shape_cast %35 : vector<48x128xf32> to vector<1x48x128xf32>
    tpu.vector_store %arg2[%c6, %c0_20, %c0_21], %41 {strides = array<i32>} : memref<13x48x128xf32, #tpu.memory_space<vmem>>, vector<1x48x128xf32>,
    %cst_22 = arith.constant 2.000000e+00 : f32
    %42 = vector.broadcast %cst_22 : f32 to vector<48x128xf32>
    %43 = arith.mulf %42, %30 : vector<48x128xf32>
    %44 = arith.mulf %43, %35 : vector<48x128xf32>
    %cst_23 = arith.constant 2.000000e+00 : f32
    %45 = vector.broadcast %cst_23 : f32 to vector<48x128xf32>
    %46 = arith.mulf %45, %30 : vector<48x128xf32>
    %47 = arith.mulf %46, %30 : vector<48x128xf32>
    %cst_24 = arith.constant 1.000000e+00 : f32
    %48 = vector.broadcast %cst_24 : f32 to vector<48x128xf32>
    %49 = arith.subf %48, %47 : vector<48x128xf32>
    %c7 = arith.constant 7 : index
    %c0_25 = arith.constant 0 : index
    %c0_26 = arith.constant 0 : index
    %50 = vector.load %arg2[%c7, %c0_25, %c0_26] : memref<13x48x128xf32, #tpu.memory_space<vmem>>, vector<1x48x128xf32>
    %51 = vector.shape_cast %50 : vector<1x48x128xf32> to vector<48x128xf32>
    %52 = vector.shape_cast %44 : vector<48x128xf32> to vector<1x48x128xf32>
    tpu.vector_store %arg2[%c7, %c0_25, %c0_26], %52 {strides = array<i32>} : memref<13x48x128xf32, #tpu.memory_space<vmem>>, vector<1x48x128xf32>,
    %c8 = arith.constant 8 : index
    %c0_27 = arith.constant 0 : index
    %c0_28 = arith.constant 0 : index
    %53 = vector.load %arg2[%c8, %c0_27, %c0_28] : memref<13x48x128xf32, #tpu.memory_space<vmem>>, vector<1x48x128xf32>
    %54 = vector.shape_cast %53 : vector<1x48x128xf32> to vector<48x128xf32>
    %55 = vector.shape_cast %49 : vector<48x128xf32> to vector<1x48x128xf32>
    tpu.vector_store %arg2[%c8, %c0_27, %c0_28], %55 {strides = array<i32>} : memref<13x48x128xf32, #tpu.memory_space<vmem>>, vector<1x48x128xf32>,
    %cst_29 = arith.constant 2.000000e+00 : f32
    %56 = vector.broadcast %cst_29 : f32 to vector<48x128xf32>
    %57 = arith.mulf %56, %44 : vector<48x128xf32>
    %58 = arith.mulf %57, %49 : vector<48x128xf32>
    %cst_30 = arith.constant 2.000000e+00 : f32
    %59 = vector.broadcast %cst_30 : f32 to vector<48x128xf32>
    %60 = arith.mulf %59, %44 : vector<48x128xf32>
    %61 = arith.mulf %60, %44 : vector<48x128xf32>
    %cst_31 = arith.constant 1.000000e+00 : f32
    %62 = vector.broadcast %cst_31 : f32 to vector<48x128xf32>
    %63 = arith.subf %62, %61 : vector<48x128xf32>
    %c9 = arith.constant 9 : index
    %c0_32 = arith.constant 0 : index
    %c0_33 = arith.constant 0 : index
    %64 = vector.load %arg2[%c9, %c0_32, %c0_33] : memref<13x48x128xf32, #tpu.memory_space<vmem>>, vector<1x48x128xf32>
    %65 = vector.shape_cast %64 : vector<1x48x128xf32> to vector<48x128xf32>
    %66 = vector.shape_cast %58 : vector<48x128xf32> to vector<1x48x128xf32>
    tpu.vector_store %arg2[%c9, %c0_32, %c0_33], %66 {strides = array<i32>} : memref<13x48x128xf32, #tpu.memory_space<vmem>>, vector<1x48x128xf32>,
    %c10 = arith.constant 10 : index
    %c0_34 = arith.constant 0 : index
    %c0_35 = arith.constant 0 : index
    %67 = vector.load %arg2[%c10, %c0_34, %c0_35] : memref<13x48x128xf32, #tpu.memory_space<vmem>>, vector<1x48x128xf32>
    %68 = vector.shape_cast %67 : vector<1x48x128xf32> to vector<48x128xf32>
    %69 = vector.shape_cast %63 : vector<48x128xf32> to vector<1x48x128xf32>
    tpu.vector_store %arg2[%c10, %c0_34, %c0_35], %69 {strides = array<i32>} : memref<13x48x128xf32, #tpu.memory_space<vmem>>, vector<1x48x128xf32>,
    %cst_36 = arith.constant 2.000000e+00 : f32
    %70 = vector.broadcast %cst_36 : f32 to vector<48x128xf32>
    %71 = arith.mulf %70, %58 : vector<48x128xf32>
    %72 = arith.mulf %71, %63 : vector<48x128xf32>
    %cst_37 = arith.constant 2.000000e+00 : f32
    %73 = vector.broadcast %cst_37 : f32 to vector<48x128xf32>
    %74 = arith.mulf %73, %58 : vector<48x128xf32>
    %75 = arith.mulf %74, %58 : vector<48x128xf32>
    %cst_38 = arith.constant 1.000000e+00 : f32
    %76 = vector.broadcast %cst_38 : f32 to vector<48x128xf32>
    %77 = arith.subf %76, %75 : vector<48x128xf32>
    %c11 = arith.constant 11 : index
    %c0_39 = arith.constant 0 : index
    %c0_40 = arith.constant 0 : index
    %78 = vector.load %arg2[%c11, %c0_39, %c0_40] : memref<13x48x128xf32, #tpu.memory_space<vmem>>, vector<1x48x128xf32>
    %79 = vector.shape_cast %78 : vector<1x48x128xf32> to vector<48x128xf32>
    %80 = vector.shape_cast %72 : vector<48x128xf32> to vector<1x48x128xf32>
    tpu.vector_store %arg2[%c11, %c0_39, %c0_40], %80 {strides = array<i32>} : memref<13x48x128xf32, #tpu.memory_space<vmem>>, vector<1x48x128xf32>,
    %c12 = arith.constant 12 : index
    %c0_41 = arith.constant 0 : index
    %c0_42 = arith.constant 0 : index
    %81 = vector.load %arg2[%c12, %c0_41, %c0_42] : memref<13x48x128xf32, #tpu.memory_space<vmem>>, vector<1x48x128xf32>
    %82 = vector.shape_cast %81 : vector<1x48x128xf32> to vector<48x128xf32>
    %83 = vector.shape_cast %77 : vector<48x128xf32> to vector<1x48x128xf32>
    tpu.vector_store %arg2[%c12, %c0_41, %c0_42], %83 {strides = array<i32>} : memref<13x48x128xf32, #tpu.memory_space<vmem>>, vector<1x48x128xf32>,
    return
  }
  func.func @transform_0(%arg0: i32) -> (i32, i32) {
    %c0_i32 = arith.constant 0 : i32
    %c0_i32_0 = arith.constant 0 : i32
    return %arg0, %c0_i32 : i32, i32
  }
  func.func @transform_1(%arg0: i32) -> (i32, i32, i32) {
    %c0_i32 = arith.constant 0 : i32
    %c0_i32_0 = arith.constant 0 : i32
    %c0_i32_1 = arith.constant 0 : i32
    return %c0_i32, %arg0, %c0_i32_0 : i32, i32, i32
  }
}

</mosaic_0001>

<bundles_post_ra>
// kernel: tpu_custom_call.1
= control target key start
LH: loop header
LB: loop body
LE: loop exit
PB: predicated region body
PF: predicated region fallthrough
CT: control target
= control target key end

     0   :  { %6 = vsyncpa [#allocation3], 0  ;;  %s3152_s0 = inlined_call_operand.hbm [shape: f32[96,128], index: 0, kind: input, shape index: {}]   ;;  %s3153_s1 = inlined_call_operand.hbm [shape: f32[13,96,128], index: 1, kind: output, shape index: {}]  }
   0x1   :  { %8 = vsyncpa [#allocation3 + $0x1], 0 }
   0x2   :  { %9 = vsyncpa [#allocation4], 0 }
   0x3   :  { %11 = vsyncpa [#allocation4 + $0x1], 0  ;;  %s2053_s6 = smov 0   ;;  %s2055_s7 = smov 0  }
   0x4   :  { %s2057_s8 = smov 0   ;;  %s2059_s9 = smov 0  }
   0x5 LB: > { %s2074_s10 = sadd.s32 4294967295, %s2025_s9   ;;  %s1711_s11 = sadd.s32 4294967294, %s2025_s9   ;;  %s2025_s9 = sphi %s2059_s9, %s3179_s9   ;;  %s2021_s8 = sphi %s2057_s8, %s3178_s8   ;;  %s2017_s7 = sphi %s2055_s7, %s3177_s7   ;;  %s2013_s6 = sphi %s2053_s6, %s3176_s6  }
   0x6   : > { %s2078_s12 = sadd.s32 1, %s2025_s9   ;;  %s24_s13 = sadd.s32 1, %s2021_s8 }
   0x7   : > { %s21_s14 = ssub.s32 %s2025_s9, %s2078_s12  ;;  %p31_p0 = scmp.ne.s32.totalorder %s2021_s8, %s2017_s7 }
   0x8   : > { %p22_p1 = scmp.eq.s32.totalorder %s21_s14, 0  ;;  %p32_p2 = scmp.eq.s32.totalorder %s2025_s9, 0 }
   0x9   : > { %p37_p3 = scmp.ne.s32.totalorder %s2017_s7, %s2013_s6  ;;  %p38_p4 = scmp.eq.s32.totalorder %s2074_s10, 0 }
   0xa   : > { %s2090_s15 = scalar_select %p22_p1, %s2021_s8, %s24_s13  }
   0xb   : > { %p33_p5 = por %p32_p2, %p31_p0  ;;  %p2092_p6 = por %p38_p4, %p37_p3 }
   0xc   : > { %p61_p7 = scmp.eq.s32.totalorder %s2074_s10, 1  ;;  %p67_p8 = scmp.eq.s32.totalorder %s1711_s11, 1 }
   0xd   : > { %s3156_s16 = scalar_select %p2092_p6, 1, 0 }
   0xe   : > { %p1886_p10 = scmp.lt.s32.totalorder %s2025_s9, 2  ;;  %p2099_p11 = por %p61_p7, %p31_p0 }
   0xf   : > { %p2103_p12 = por %p67_p8, %p37_p3  ;;  %s87_s19 = sand.u32 1, %s2021_s8  }
  0x10   : > { %s3157_s17 = scalar_select %p2099_p11, 1, 0 }
  0x11   : > { %s3158_s18 = scalar_select %p2103_p12, 1, 0 }
  0x12   : > { %s1839_s20 = smul.u32 768, %s2025_s9  ;;  %p2114_p13 = pnand %p1886_p10, %p33_p5 }
  0x13   : > { %s1841_s21 = smul.u32 48, %s87_s19  ;;  %s2120_s28 = scalar_lea.sflag [#allocation3], %s87_s19 }
  0x14   : > { %s2112_s24 = scalar_lea.hbm %s3152_s0, %s1839_s20  ;;  %p1961_p1 = pneg %p2114_p13 }
  0x15   : > { %s91_s26 = scalar_lea.vmem [#allocation2], %s1841_s21  ;;  %s1959_s29 = scalar_lea.hbm %s2112_s24, 768 }
  0x16   : > { %s98_s27 = sshll.u32 %s91_s26, 4  ;;  %p1960_p0 = scmp.ne.s32.totalorder %s2112_s24, %s1959_s29  ;;  %s2118_s27 = int_to_ptr.vmem [resolvable:$true] %s98_s27 }
  0x17   : > { %s1964_s3 = scalar_lea.hbm %s3152_s0, 1536  ;;  %p1965_p4 = scmp.lt.s32.totalorder %s2112_s24, %s3152_s0 }
  0x18   : > { %p1962_p2 = pnand %p1961_p1, %p1960_p0  ;;  %p1966_p5 = scmp.lt.s32.totalorder %s1964_s3, %s1959_s29 }
  0x1a   : > { %p1963_p3 = pneg %p1962_p2  ;;  %p1967_p7 = por %p1966_p5, %p1965_p4 }
  0x1c   : > { %p1968_p8 = pnand %p1967_p7, %p1963_p3 }
  0x1e   : > { %1971 = shalt.err (!%p1968_p8)
}
  0x1f   : > { %s1972_s11 = scalar_lea.vmem %s2118_s27, 768  ;;  %s2027_s13 = smov [#allocation2]  }
  0x20   : > { %p1973_p10 = scmp.ne.s32.totalorder %s2118_s27, %s1972_s11  ;;  %s1977_s14 = sshll.u32 %s2027_s13, 4  ;;  %s1978_s14 = int_to_ptr.vmem [resolvable:$false] %s1977_s14 }
  0x21   : > { %s1979_s19 = scalar_lea.vmem %s1978_s14, 1536  ;;  %p1980_p2 = scmp.lt.s32.totalorder %s2118_s27, %s1978_s14 }
  0x22   : > { %p1975_p9 = pnand %p1973_p10, %p1961_p1  ;;  %p1981_p12 = scmp.lt.s32.totalorder %s1979_s19, %s1972_s11 }
  0x24   : > { %p1976_p0 = pneg %p1975_p9  ;;  %p1982_p11 = por %p1981_p12, %p1980_p2 }
  0x26   : > { %p1983_p6 = pnand %p1982_p11, %p1976_p0 }
  0x28   : > { %1986 = shalt.err (!%p1983_p6)
}
  0x29   : > { %s2028_s20 = smov 128   ;;  %s2029_s21 = smov 8  }
  0x2a   : > { %1881 = dma.hbm_to_vmem [thread:$0]  (!%p2114_p13), %s2112_s24, 768, %s2118_s27, %s2120_s28, %s2028_s20, %s2028_s20, %s2029_s21  }
  0x2b   : > { %p1715_p9 = scmp.ge.s32.totalorder %s2025_s9, 1  ;;  %p106_p1 = scmp.lt.s32.totalorder %s2025_s9, 3 }
  0x2d   : > { %p107_p3 = pnand %p1715_p9, %p106_p1 }
  0x2e   : > { %s2144_s22 = sand.u32 (!%p107_p3), 1, %s2017_s7   ;;  %p3160_p6 = scmp.ne.s32.totalorder (!%p107_p3), %s3156_s16, 0 }
  0x2f   : > { %110 = sbr.rel (%p107_p3) target bundleno = 280 (0x118), region = 24  ;;  %s113_s26 = scalar_lea.sflag (!%p107_p3), [#allocation3], %s2144_s22 }
  0x30   : > { %s1842_s23 = smul.u32 (!%p107_p3), 48, %s2144_s22 }
  0x32   : > { %s116_s29 = scalar_lea.vmem (!%p107_p3), [#allocation2], %s1842_s23 }
  0x34   : > { %2004 = dma.done.wait (%p3160_p6), %s113_s26, 768  }
  0x35   : > { %2006 = vsyncadd (%p3160_p6), %s113_s26, 4294966528  ;;  %s1843_s24 = smul.u32 624, %s2144_s22  ;;  %v137_v0 = vld [vmem:[%s116_s29] sm:$0xff]  ;;  %v138_v1 = vld [vmem:[%s116_s29 + $0x8] sm:$0xff]  ;;  %v2030_v48 = vmov 2102212464  }
  0x36   : > { %v139_v2 = vld [vmem:[%s116_s29 + $0x10] sm:$0xff]  ;;  %v2156_v3 = vmul.f32 3.1415927, %v137_v0  ;;  %v2159_v4 = vmul.f32 3.1415927, %v138_v1  ;;  %v140_v6 = vld [vmem:[%s116_s29 + $0x18] sm:$0xff] }
  0x37   : > { %s2153_s25 = scalar_lea.vmem [#allocation5], %s1843_s24  ;;  %v2162_v5 = vmul.f32 3.1415927, %v139_v2  ;;  %v141_v7 = vld [vmem:[%s116_s29 + $0x20] sm:$0xff]  ;;  %v142_v8 = vld [vmem:[%s116_s29 + $0x28] sm:$0xff]  ;;  %s1602_s16 = scalar_lea.sflag [#allocation4], %s2144_s22 }
  0x38   : > { %143 = vst [vmem:[%s2153_s25] sm:$0xff] %v137_v0  ;;  %144 = vst [vmem:[%s2153_s25 + $0x8] sm:$0xff] %v138_v1  ;;  %v158_v9 = vand.u32 2139095040, %v2156_v3  ;;  %v262_v10 = vand.u32 2139095040, %v2159_v4  ;;  %v2168_v12 = vmul.f32 3.1415927, %v140_v6 }
  0x39   : > { %145 = vst [vmem:[%s2153_s25 + $0x10] sm:$0xff] %v139_v2  ;;  %v366_v11 = vand.u32 2139095040, %v2162_v5  ;;  %146 = vst [vmem:[%s2153_s25 + $0x18] sm:$0xff] %v140_v6  ;;  %v2172_v13 = vmul.f32 3.1415927, %v141_v7 }
  0x3a   : > { %147 = vst [vmem:[%s2153_s25 + $0x20] sm:$0xff] %v141_v7  ;;  %148 = vst [vmem:[%s2153_s25 + $0x28] sm:$0xff] %v142_v8  ;;  %v159_v14 = vshrl.u32 %v158_v9, 23  ;;  %v263_v15 = vshrl.u32 %v262_v10, 23  ;;  %v470_v21 = vand.u32 2139095040, %v2168_v12 }
  0x3b   : > { %v367_v16 = vshrl.u32 %v366_v11, 23  ;;  %v574_v17 = vand.u32 2139095040, %v2172_v13  ;;  %v2176_v26 = vmul.f32 3.1415927, %v142_v8  ;;  %v155_v33 = vand.u32 2147483647, %v2156_v3 }
  0x3c   : > { %v1716_v18 = vadd.s32 4294967169, %v159_v14  ;;  %v1720_v19 = vadd.s32 4294967169, %v263_v15  ;;  %v471_v28 = vshrl.u32 %v470_v21, 23  ;;  %v259_v47 = vand.u32 2147483647, %v2159_v4 }
  0x3d   : > { %v1724_v20 = vadd.s32 4294967169, %v367_v16  ;;  %v575_v22 = vshrl.u32 %v574_v17, 23  ;;  %v678_v32 = vand.u32 2139095040, %v2176_v26  ;;  %v2186_v39 = vand.u32 8388607, %v155_v33 }
  0x3e   : > { %v165_v23 = vadd.s32 1, %v1716_v18  ;;  %v269_v24 = vadd.s32 1, %v1720_v19  ;;  %v1728_v36 = vadd.s32 4294967169, %v471_v28  ;;  %v2031_v53 = vmov 920167782  }
  0x3f   : > { %v373_v25 = vadd.s32 1, %v1724_v20  ;;  %v1732_v27 = vadd.s32 4294967169, %v575_v22  ;;  %v679_v38 = vshrl.u32 %v678_v32, 23  ;;  %v163_v52 = vor.u32 8388608, %v2186_v39 }
  0x40   : > { %vm166_vm0 = vcmp.gt.s32.totalorder %v165_v23, 0  ;;  %vm270_vm1 = vcmp.gt.s32.totalorder %v269_v24, 0  ;;  %v477_v43 = vadd.s32 1, %v1728_v36  ;;  %v2032_v56 = vmov 1326507024  }
  0x41   : > { %v167_v29 = vsel %vm166_vm0, %v165_v23, 0  ;;  %vm374_vm2 = vcmp.gt.s32.totalorder %v373_v25, 0  ;;  %v271_v30 = vsel %vm270_vm1, %v269_v24, 0  ;;  %v581_v31 = vadd.s32 1, %v1732_v27 }
  0x42   : > { %v2180_v34 = vand.u32 31, %v167_v29  ;;  %v375_v35 = vsel %vm374_vm2, %v373_v25, 0  ;;  %v2182_v37 = vand.u32 31, %v271_v30  ;;  %v2193_v42 = vshrl.u32 %v167_v29, 5 }
  0x43   : > { %vm582_vm3 = vcmp.gt.s32.totalorder %v581_v31, 0  ;;  %v2191_v41 = vand.u32 31, %v375_v35  ;;  %v2195_v44 = vshrl.u32 %v271_v30, 5  ;;  %v2205_v50 = vshrl.u32 %v375_v35, 5 }
  0x44   : > { %v2189_v40 = vsub.s32 32, %v2180_v34  ;;  %v2198_v45 = vsub.s32 32, %v2182_v37  ;;  %v2200_v46 = vsel %vm582_vm3, %v581_v31, 0  ;;  %v181_v49 = vshll.u32 %v2030_v48, %v2180_v34 }
  0x45   : > { %v1736_v51 = vadd.s32 4294967169, %v679_v38  ;;  %v184_v55 = vshll.u32 %v2031_v53, %v2180_v34  ;;  %v2215_v58 = vsub.s32 32, %v2191_v41  ;;  %vm190_vm4 = vcmp.lt.s32.totalorder %v2193_v42, 4 }
  0x46   : > { %v182_v54 = vshrl.u32 %v2031_v53, %v2189_v40  ;;  %v185_v57 = vshrl.u32 %v2032_v56, %v2189_v40  ;;  %v285_v59 = vshll.u32 %v2030_v48, %v2182_v37  ;;  %vm478_vm5 = vcmp.gt.s32.totalorder %v477_v43, 0 }
  0x47   : > { %v2221_v60 = vand.u32 31, %v2200_v46  ;;  %v286_v61 = vshrl.u32 %v2031_v53, %v2198_v45  ;;  %v288_v62 = vshll.u32 %v2031_v53, %v2182_v37  ;;  %v289_v63 = vshrl.u32 %v2032_v56, %v2198_v45 }
  0x48   : > { %vm294_vm6 = vcmp.lt.s32.totalorder %v2195_v44, 4  ;;  %v389_v0 = vshll.u32 %v2030_v48, %v2191_v41  ;;  %v392_v1 = vshll.u32 %v2031_v53, %v2191_v41  ;;  %v183_v7 = vor.u32 %v182_v54, %v181_v49 }
  0x49   : > { %v2235_v2 = vsub.s32 32, %v2221_v60  ;;  %v2239_v6 = vshll.u32 %v2031_v53, %v2221_v60  ;;  %v186_v8 = vor.u32 %v185_v57, %v184_v55  ;;  %v390_v9 = vshrl.u32 %v2031_v53, %v2215_v58 }
  0x4a   : > { %v685_v10 = vadd.s32 1, %v1736_v51  ;;  %v393_v11 = vshrl.u32 %v2032_v56, %v2215_v58  ;;  %v2033_v15 = vmov 683565275   ;;  %v2034_v17 = vmov 2475754826  }
  0x4b   : > { %v2247_v14 = vshrl.u32 %v2032_v56, %v2235_v2  ;;  %v172_v16 = vshll.u32 %v2033_v15, %v2180_v34  ;;  %v173_v18 = vshrl.u32 %v2034_v17, %v2189_v40  ;;  %v2253_v19 = vor.u32 %v286_v61, %v285_v59 }
  0x4c   : > { %v290_v20 = vor.u32 %v289_v63, %v288_v62  ;;  %vm398_vm7 = vcmp.lt.s32.totalorder %v2205_v50, 4  ;;  %vm686_vm8 = vcmp.gt.s32.totalorder %v685_v10, 0  ;;  %v479_v21 = vsel %vm478_vm5, %v477_v43, 0 }
  0x4d   : > { %v602_v22 = vor.u32 %v2247_v14, %v2239_v6  ;;  %v2259_v23 = vsel %vm686_vm8, %v685_v10, 0  ;;  %v175_v24 = vshll.u32 %v2034_v17, %v2180_v34  ;;  %v196_v25 = vsel %vm190_vm4, %v183_v7, 920167782 }
  0x4e   : > { %v200_v27 = vsel %vm190_vm4, %v186_v8, 1326507024  ;;  %v2267_v28 = vor.u32 %v390_v9, %v389_v0  ;;  %v2270_v29 = vand.u32 31, %v2259_v23  ;;  %v394_v30 = vor.u32 %v393_v11, %v392_v1 }
  0x4f   : > { %v174_v31 = vor.u32 %v173_v18, %v172_v16  ;;  %v2035_v32 = vmov 2131351028   ;;  %v300_v38 = vsel %vm294_vm6, %v2253_v19, 920167782  ;;  %v171_v49 = vshrl.u32 %v2033_v15, %v2189_v40 }
  0x50   : > { %v176_v35 = vshrl.u32 %v2035_v32, %v2189_v40  ;;  %v178_v36 = vshll.u32 %v2035_v32, %v2180_v34  ;;  %v2280_v39 = vsub.s32 32, %v2270_v29  ;;  %v2284_v43 = vshll.u32 %v2031_v53, %v2270_v29 }
  0x51   : > { %v304_v51 = vsel %vm294_vm6, %v290_v20, 1326507024  ;;  %v179_v34 = vshrl.u32 %v2030_v48, %v2189_v40  ;;  %vm187_vm9 = vcmp.lt.s32.totalorder %v2193_v42, 1  ;;  %v2293_v55 = vshrl.u32 %v479_v21, 5 }
  0x52   : > { %v177_v54 = vor.u32 %v176_v35, %v175_v24  ;;  %v2295_v57 = vand.u32 31, %v479_v21  ;;  %v2299_v59 = vshrl.u32 %v2032_v56, %v2280_v39  ;;  %vm189_vm10 = vcmp.lt.s32.totalorder %v2193_v42, 3 }
  0x53   : > { %v180_v61 = vor.u32 %v179_v34, %v178_v36  ;;  %vm188_vm11 = vcmp.lt.s32.totalorder %v2193_v42, 2  ;;  %v203_v63 = vshll.u32 %v163_v52, 8  ;;  %v191_v0 = vsel %vm187_vm9, %v171_v49, %v174_v31 }
  0x54   : > { %v195_v62 = vsel %vm187_vm9, %v174_v31, %v177_v54  ;;  %v706_v40 = vor.u32 %v2299_v59, %v2284_v43  ;;  %v201_v1 = vsel %vm189_vm10, %v183_v7, %v200_v27  ;;  %v266_v8 = vand.u32 8388607, %v259_v47 }
  0x55   : > { %v2314_v9 = vsel %vm398_vm7, %v2267_v28, 920167782  ;;  %v192_v10 = vsel %vm190_vm4, %v180_v61, 2102212464  ;;  %v197_v11 = vsel %vm189_vm10, %v180_v61, %v196_v25  ;;  %v199_v52 = vsel %vm187_vm9, %v177_v54, %v180_v61 }
  0x56   : > { %v2322_v16 = vsel %vm398_vm7, %v394_v30, 1326507024  ;;  %v2325_v7 = vsub.s32 32, %v2295_v57  ;;  %v193_v18 = vsel %vm189_vm10, %v177_v54, %v192_v10  ;;  %v198_v20 = vsel %vm188_vm11, %v195_v62, %v197_v11 }
  0x57   : > { %v194_v21 = vsel %vm188_vm11, %v191_v0, %v193_v18  ;;  %v202_v24 = vsel %vm188_vm11, %v199_v52, %v201_v1  ;;  %v2333_v25 = vmul.u32.u64.low %v203_v63, %v198_v20  ;;  %v2334_v27 = vmul.u32.u64.high %v203_v63, %v198_v20, %v2333_v25 }
  0x58   : > { %v2337_v31 = vmul.u32.u64.low %v203_v63, %v202_v24  ;;  %v2338_v30 = vmul.u32.u64.high %v203_v63, %v202_v24, %v2337_v31  ;;  %v267_v35 = vor.u32 8388608, %v266_v8  ;;  %v275_v36 = vshrl.u32 %v2033_v15, %v2198_v45 }
  0x59   : > { %v276_v49 = vshll.u32 %v2033_v15, %v2182_v37  ;;  %v277_v54 = vshrl.u32 %v2034_v17, %v2198_v45  ;;  %v279_v42 = vshll.u32 %v2034_v17, %v2182_v37  ;;  %v280_v34 = vshrl.u32 %v2035_v32, %v2198_v45 }
  0x5a   : > { %v210_v61 = vmul.u32 %v203_v63, %v194_v21  ;;  %v282_v62 = vshll.u32 %v2035_v32, %v2182_v37  ;;  %v283_v0 = vshrl.u32 %v2030_v48, %v2198_v45  ;;  %vm291_vm12 = vcmp.lt.s32.totalorder %v2195_v44, 1 }
  0x5b   : > { %v213_v1 = vadd.s32 1, %v2334_v27  ;;  %v278_v8 = vor.u32 %v277_v54, %v276_v49  ;;  %v281_v10 = vor.u32 %v280_v34, %v279_v42  ;;  %vm293_vm13 = vcmp.lt.s32.totalorder %v2195_v44, 3 }
  0x5c   : > { %vm212_vm14 = vc.u32 %v2338_v30, %v2333_v25  ;;  %v284_v11 = vor.u32 %v283_v0, %v282_v62  ;;  %vm292_vm15 = vcmp.lt.s32.totalorder %v2195_v44, 2  ;;  %v305_v63 = vsel %vm293_vm13, %v2253_v19, %v304_v51 }
  0x5d   : > { %v214_v37 = vsel %vm212_vm14, %v213_v1, %v2334_v27  ;;  %v295_v45 = vsel %vm291_vm12, %v275_v36, %v278_v8  ;;  %v299_v52 = vsel %vm291_vm12, %v278_v8, %v281_v10  ;;  %v307_v18 = vshll.u32 %v267_v35, 8 }
  0x5e   : > { %v215_v20 = vadd.s32 %v214_v37, %v210_v61  ;;  %v296_v21 = vsel %vm294_vm6, %v284_v11, 2102212464  ;;  %v301_v24 = vsel %vm293_vm13, %v284_v11, %v300_v38  ;;  %v303_v31 = vsel %vm291_vm12, %v281_v10, %v284_v11 }
  0x5f   : > { %v493_v19 = vshll.u32 %v2030_v48, %v2295_v57  ;;  %v297_v51 = vsel %vm293_vm13, %v281_v10, %v296_v21  ;;  %v302_v27 = vsel %vm292_vm15, %v299_v52, %v301_v24  ;;  %v306_v36 = vsel %vm292_vm15, %v303_v31, %v305_v63 }
  0x60   : > { %v494_v35 = vshrl.u32 %v2031_v53, %v2325_v7  ;;  %v216_v49 = vadd.s32 536870912, %v215_v20  ;;  %v2378_v54 = vmul.u32.u64.low %v307_v18, %v306_v36  ;;  %v2379_v42 = vmul.u32.u64.high %v307_v18, %v306_v36, %v2378_v54 }
  0x61   : > { %v2382_v38 = vshrl.u32 %v2200_v46, 5  ;;  %v298_v34 = vsel %vm292_vm15, %v295_v45, %v297_v51  ;;  %v2386_v61 = vmul.u32.u64.low %v307_v18, %v302_v27  ;;  %v2387_v62 = vmul.u32.u64.high %v307_v18, %v302_v27, %v2386_v61 }
  0x62   : > { %v496_v0 = vshll.u32 %v2031_v53, %v2295_v57  ;;  %vm502_vm0 = vcmp.lt.s32.totalorder %v2293_v55, 4  ;;  %v217_v1 = vshrl.u32 %v216_v49, 30  ;;  %v363_v8 = vand.u32 2147483647, %v2162_v5 }
  0x63   : > { %v497_v10 = vshrl.u32 %v2032_v56, %v2325_v7  ;;  %v597_v46 = vshll.u32 %v2030_v48, %v2221_v60  ;;  %v598_v44 = vshrl.u32 %v2031_v53, %v2235_v2  ;;  %v383_v11 = vshll.u32 %v2034_v17, %v2191_v41 }
  0x64   : > { %v2402_v63 = vor.u32 %v494_v35, %v493_v19  ;;  %v218_v37 = vshll.u32 %v217_v1, 30  ;;  %v314_v45 = vmul.u32 %v307_v18, %v298_v34  ;;  %vm316_vm1 = vc.u32 %v2379_v42, %v2386_v61 }
  0x65   : > { %v317_v52 = vadd.s32 1, %v2387_v62  ;;  %v380_v56 = vshll.u32 %v2033_v15, %v2191_v41  ;;  %v381_v21 = vshrl.u32 %v2034_v17, %v2215_v58  ;;  %v384_v24 = vshrl.u32 %v2035_v32, %v2215_v58 }
  0x66   : > { %vm157_vm2 = vcmp.lt.s32.totalorder %v2156_v3, 0  ;;  %v2414_v31 = vsub.s32 %v215_v20, %v218_v37  ;;  %v370_v18 = vand.u32 8388607, %v363_v8  ;;  %v386_v19 = vshll.u32 %v2035_v32, %v2191_v41 }
  0x67   : > { %v387_v51 = vshrl.u32 %v2030_v48, %v2215_v58  ;;  %v498_v27 = vor.u32 %v497_v10, %v496_v0  ;;  %v2422_v36 = vor.u32 %v598_v44, %v597_v46  ;;  %v318_v35 = vsel %vm316_vm1, %v317_v52, %v2387_v62 }
  0x68   : > { %v385_v49 = vor.u32 %v384_v24, %v383_v11  ;;  %v221_v54 = vsub.s32 0, %v2414_v31  ;;  %v319_v34 = vadd.s32 %v318_v35, %v314_v45  ;;  %vm395_vm3 = vcmp.lt.s32.totalorder %v2205_v50, 1 }
  0x69   : > { %v388_v20 = vor.u32 %v387_v51, %v386_v19  ;;  %v2430_v37 = vsel %vm502_vm0, %v2402_v63, 920167782  ;;  %vm606_vm4 = vcmp.lt.s32.totalorder %v2382_v38, 4  ;;  %vm2435_vm5 = vcmp.le.f32.partialorder %v155_v33, 0.7853982 }
  0x6a   : > { %v382_v62 = vor.u32 %v381_v21, %v380_v56  ;;  %vm397_vm6 = vcmp.lt.s32.totalorder %v2205_v50, 3  ;;  %v1717_v0 = vmin.u32 %v221_v54, %v2414_v31  ;;  %v320_v10 = vadd.s32 536870912, %v319_v34 }
  0x6b   : > { %v371_v46 = vor.u32 8388608, %v370_v18  ;;  %vm396_vm8 = vcmp.lt.s32.totalorder %v2205_v50, 2  ;;  %v2444_v44 = vsel %vm502_vm0, %v498_v27, 1326507024  ;;  %v241_v11 = vsub.s32 4, %v217_v1 }
  0x6c   : > { %v407_v33 = vsel %vm395_vm3, %v385_v49, %v388_v20  ;;  %v409_v45 = vsel %vm397_vm6, %v2267_v28, %v2322_v16  ;;  %v2455_v52 = vsel %vm606_vm4, %v2422_v36, 920167782  ;;  %v2458_v56 = vshrl.u32 %v2259_v23, 5 }
  0x6d   : > { %v223_v21 = vclz %v1717_v0  ;;  %v379_v24 = vshrl.u32 %v2033_v15, %v2215_v58  ;;  %v2462_v18 = vshrl.u32 %v320_v10, 30  ;;  %v403_v19 = vsel %vm395_vm3, %v382_v62, %v385_v49 }
  0x6e   : > { %v405_v28 = vsel %vm397_vm6, %v388_v20, %v2314_v9  ;;  %v410_v16 = vsel %vm396_vm8, %v407_v33, %v409_v45  ;;  %v2476_v23 = vsel %vm606_vm4, %v602_v22, 1326507024  ;;  %v400_v51 = vsel %vm398_vm7, %v388_v20, 2102212464 }
  0x6f   : > { %v1718_v58 = vadd.s32 4294967294, %v223_v21  ;;  %v411_v27 = vshll.u32 %v371_v46, 8  ;;  %v2482_v35 = vshll.u32 %v2030_v48, %v2270_v29  ;;  %v211_v9 = vadd.s32 %v2333_v25, %v2338_v30 }
  0x70   : > { %v242_v54 = vsel %vm157_vm2, %v241_v11, %v217_v1  ;;  %v322_v6 = vshll.u32 %v2462_v18, 30  ;;  %v406_v14 = vsel %vm396_vm8, %v403_v19, %v405_v28  ;;  %v399_v46 = vsel %vm395_vm3, %v379_v24, %v382_v62 }
  0x71   : > { %vm1719_vm9 = vcmp.lt.s32.totalorder %v1718_v58, 0  ;;  %v2491_v22 = vmul.u32.u64.low %v411_v27, %v410_v16  ;;  %v2492_v0 = vmul.u32.u64.high %v411_v27, %v410_v16, %v2491_v22  ;;  %v401_v25 = vsel %vm397_vm6, %v385_v49, %v400_v51 }
  0x72   : > { %v226_v20 = vsel %vm1719_vm9, 0, %v1718_v58  ;;  %v2494_v10 = vsub.s32 %v319_v34, %v322_v6  ;;  %v2503_v33 = vsel %vm2435_vm5, 0, %v242_v54  ;;  %v2507_v45 = vshrl.u32 %v2031_v53, %v2280_v39 }
  0x73   : > { %v227_v30 = vsub.s32 32, %v226_v20  ;;  %v228_v1 = vshll.u32 %v2414_v31, %v226_v20  ;;  %v231_v11 = vsub.s32 4294967266, %v226_v20  ;;  %v402_v31 = vsel %vm396_vm8, %v399_v46, %v401_v25 }
  0x74   : > { %v325_v34 = vsub.s32 0, %v2494_v10  ;;  %v2510_v21 = vmul.u32.u64.low %v411_v27, %v406_v14  ;;  %v2511_v19 = vmul.u32.u64.high %v411_v27, %v406_v14, %v2510_v21  ;;  %v467_v24 = vand.u32 2147483647, %v2168_v12 }
  0x75   : > { %v229_v62 = vshrl.u32 %v211_v9, %v227_v30  ;;  %v232_v49 = vadd.s32 127, %v231_v11  ;;  %v2518_v28 = vadd.s32 3, %v2503_v33  ;;  %vm261_vm7 = vcmp.lt.s32.totalorder %v2159_v4, 0 }
  0x76   : > { %v315_v53 = vadd.s32 %v2386_v61, %v2379_v42  ;;  %v1721_v16 = vmin.u32 %v325_v34, %v2494_v10  ;;  %v345_v58 = vsub.s32 4, %v2462_v18  ;;  %v484_v50 = vshll.u32 %v2033_v15, %v2295_v57 }
  0x77   : > { %v230_v51 = vor.u32 %v229_v62, %v228_v1  ;;  %v233_v9 = vshll.u32 %v232_v49, 23  ;;  %v485_v54 = vshrl.u32 %v2034_v17, %v2325_v7  ;;  %v418_v14 = vmul.u32 %v411_v27, %v402_v31 }
  0x78   : > { %v327_v6 = vclz %v1721_v16  ;;  %vm420_vm10 = vc.u32 %v2492_v0, %v2510_v21  ;;  %v483_v42 = vshrl.u32 %v2033_v15, %v2325_v7  ;;  %v421_v20 = vadd.s32 1, %v2511_v19 }
  0x79   : > { %v234_v61 = vor.u32 4788187, %v233_v9  ;;  %v237_v22 = vcvt.s32.f32 %v230_v51  ;;  %v474_v46 = vand.u32 8388607, %v467_v24  ;;  %v487_v30 = vshll.u32 %v2034_v17, %v2295_v57 }
  0x7a   : > { %v1722_v25 = vadd.s32 4294967294, %v327_v6  ;;  %v488_v27 = vshrl.u32 %v2035_v32, %v2325_v7  ;;  %v490_v1 = vshll.u32 %v2035_v32, %v2295_v57  ;;  %v422_v34 = vsel %vm420_vm10, %v421_v20, %v2511_v19 }
  0x7b   : > { %v235_v11 = vand.u32 2147483647, %v234_v61  ;;  %v486_v62 = vor.u32 %v485_v54, %v484_v50  ;;  %v491_v49 = vshrl.u32 %v2030_v48, %v2325_v7  ;;  %v423_v31 = vadd.s32 %v422_v34, %v418_v14 }
  0x7c   : > { %vm1723_vm11 = vcmp.lt.s32.totalorder %v1722_v25, 0  ;;  %v489_v16 = vor.u32 %v488_v27, %v487_v30  ;;  %vm499_vm12 = vcmp.lt.s32.totalorder %v2293_v55, 1  ;;  %vm2548_vm13 = vcmp.le.f32.partialorder %v259_v47, 0.7853982 }
  0x7d   : > { %v238_v51 = vmul.f32 %v237_v22, %v235_v11  ;;  %v330_v57 = vsel %vm1723_vm11, 0, %v1722_v25  ;;  %v492_v6 = vor.u32 %v491_v49, %v490_v1  ;;  %vm501_vm14 = vcmp.lt.s32.totalorder %v2293_v55, 3 }
  0x7e   : > { %vm710_vm15 = vcmp.lt.s32.totalorder %v2458_v56, 4  ;;  %v331_v19 = vsub.s32 32, %v330_v57  ;;  %v332_v7 = vshll.u32 %v2494_v10, %v330_v57  ;;  %v335_v50 = vsub.s32 4294967266, %v330_v57 }
  0x7f   : > { %v424_v54 = vadd.s32 536870912, %v423_v31  ;;  %v239_v14 = vxor.u32 2147483648, %v238_v51  ;;  %v346_v61 = vsel %vm261_vm7, %v345_v58, %v2462_v18  ;;  %v475_v47 = vor.u32 8388608, %v474_v46 }
  0x80   : > { %vm500_vm1 = vcmp.lt.s32.totalorder %v2293_v55, 2  ;;  %v333_v22 = vshrl.u32 %v315_v53, %v331_v19  ;;  %v336_v20 = vadd.s32 127, %v335_v50  ;;  %v504_v30 = vsel %vm502_vm0, %v492_v6, 2102212464 }
  0x81   : > { %v425_v25 = vshrl.u32 %v424_v54, 30  ;;  %v240_v27 = vsel %vm157_vm2, %v239_v14, %v238_v51  ;;  %v507_v10 = vsel %vm499_vm12, %v486_v62, %v489_v16  ;;  %v509_v1 = vsel %vm501_vm14, %v492_v6, %v2430_v37 }
  0x82   : > { %v511_v18 = vsel %vm499_vm12, %v489_v16, %v492_v6  ;;  %v243_v53 = vsel %vm2435_vm5, %v2156_v3, %v240_v27  ;;  %v334_v58 = vor.u32 %v333_v22, %v332_v7  ;;  %v337_v46 = vshll.u32 %v336_v20, 23 }
  0x83   : > { %v426_v11 = vshll.u32 %v425_v25, 30  ;;  %1935 = vcosq.f32 %v243_v53  ;;  %v503_v34 = vsel %vm499_vm12, %v483_v42, %v486_v62  ;;  %v505_v49 = vsel %vm501_vm14, %v489_v16, %v504_v30 }
  0x84   : > { %v513_v37 = vsel %vm501_vm14, %v2402_v63, %v2444_v44  ;;  %1937 = vsinq.f32 %v243_v53  ;;  %v338_v51 = vor.u32 4788187, %v337_v46  ;;  %v341_v57 = vcvt.s32.f32 %v334_v58 }
  0x85   : > { %v2581_v41 = vsub.s32 %v423_v31, %v426_v11  ;;  %v2585_v6 = vor.u32 %v2507_v45, %v2482_v35  ;;  %v510_v42 = vsel %vm500_vm1, %v507_v10, %v509_v1  ;;  %v514_v62 = vsel %vm500_vm1, %v511_v18, %v513_v37 }
  0x86   : > { %v515_v16 = vshll.u32 %v475_v47, 8  ;;  %v2592_v19 = vand.u32 3, %v2518_v28  ;;  %v339_v63 = vand.u32 2147483647, %v338_v51  ;;  %v2596_v44 = vsel %vm2548_vm13, 0, %v346_v61 }
  0x87   : > { %v429_v31 = vsub.s32 0, %v2581_v41  ;;  %v449_v7 = vsub.s32 4, %v425_v25  ;;  %v506_v35 = vsel %vm500_vm1, %v503_v34, %v505_v49  ;;  %v2612_v61 = vsel %vm710_vm15, %v2585_v6, 920167782 }
  0x88   : > { %v2601_v45 = vmul.u32.u64.low %v515_v16, %v514_v62  ;;  %v2602_v50 = vmul.u32.u64.high %v515_v16, %v514_v62, %v2601_v45  ;;  %v342_v54 = vmul.f32 %v341_v57, %v339_v63  ;;  %v2619_v55 = vsel %vm710_vm15, %v706_v40, 1326507024 }
  0x89   : > { %v1725_v14 = vmin.u32 %v429_v31, %v2581_v41  ;;  %v2605_v47 = vmul.u32.u64.low %v515_v16, %v510_v42  ;;  %v2606_v28 = vmul.u32.u64.high %v515_v16, %v510_v42, %v2605_v47  ;;  %v352_v22 = vadd.s32 3, %v2596_v44 }
  0x8a   : > { %v343_v20 = vxor.u32 2147483648, %v342_v54  ;;  %vm2624_vm0 = vcmp.le.f32.partialorder %v363_v8, 0.7853982  ;;  %vm365_vm2 = vcmp.lt.s32.totalorder %v2162_v5, 0  ;;  %vm247_vm3 = vweird.f32 %v2156_v3 }
  0x8b   : > { %v431_v27 = vclz %v1725_v14  ;;  %vm250_vm5 = vcmp.lt.s32.totalorder %v2592_v19, 2  ;;  %vm251_vm6 = vcmp.eq.s32.totalorder %v2592_v19, 0  ;;  %v450_v43 = vsel %vm365_vm2, %v449_v7, %v425_v25 }
  0x8c   : > { %v522_v59 = vmul.u32 %v515_v16, %v506_v35  ;;  %v344_v40 = vsel %vm261_vm7, %v343_v20, %v342_v54  ;;  %vm524_vm8 = vc.u32 %v2602_v50, %v2605_v47  ;;  %v525_v10 = vadd.s32 1, %v2606_v28 }
  0x8d   : > { %v1726_v8 = vadd.s32 4294967294, %v431_v27  ;;  %vm254_vm9 = vcmp.eq.s32.totalorder %v2592_v19, 2  ;;  %v347_v1 = vsel %vm2548_vm13, %v2159_v4, %v344_v40  ;;  %v2643_v18 = vand.u32 3, %v352_v22 }
  0x8e   : > { %v419_v25 = vadd.s32 %v2510_v21, %v2492_v0  ;;  %1939 = vcosq.f32 %v347_v1  ;;  %v2649_v53 = vsel %vm2624_vm0, 0, %v450_v43  ;;  %v526_v58 = vsel %vm524_vm8, %v525_v10, %v2606_v28 }
  0x8f   : > { %vm1727_vm10 = vcmp.lt.s32.totalorder %v1726_v8, 0  ;;  %1941 = vsinq.f32 %v347_v1  ;;  %v527_v11 = vadd.s32 %v526_v58, %v522_v59  ;;  %v571_v34 = vand.u32 2147483647, %v2172_v13 }
  0x90   : > { %v434_v46 = vsel %vm1727_vm10, 0, %v1726_v8  ;;  %v2653_v9 = vpop.eup %1935  ;;  %v591_v0 = vshll.u32 %v2034_v17, %v2221_v60  ;;  %v592_v62 = vshrl.u32 %v2035_v32, %v2235_v2  ;;  %v594_v16 = vshll.u32 %v2035_v32, %v2221_v60 }
  0x91   : > { %v435_v49 = vsub.s32 32, %v434_v46  ;;  %v436_v37 = vshll.u32 %v2581_v41, %v434_v46  ;;  %v439_v51 = vsub.s32 4294967266, %v434_v46  ;;  %v2658_v21 = vpop.eup %1937  ;;  %v255_v57 = vxor.u32 2147483648, %v2653_v9 }
  0x92   : > { %v528_v42 = vadd.s32 536870912, %v527_v11  ;;  %v252_v63 = vxor.u32 2147483648, %v2658_v21  ;;  %v595_v41 = vshrl.u32 %v2030_v48, %v2235_v2  ;;  %v588_v54 = vshll.u32 %v2033_v15, %v2221_v60 }
  0x93   : > { %v437_v31 = vshrl.u32 %v419_v25, %v435_v49  ;;  %v440_v7 = vadd.s32 127, %v439_v51  ;;  %v256_v35 = vsel %vm254_vm9, %v255_v57, %v2658_v21  ;;  %v589_v14 = vshrl.u32 %v2034_v17, %v2235_v2 }
  0x94   : > { %v2673_v45 = vshrl.u32 %v528_v42, 30  ;;  %v253_v28 = vsel %vm251_vm6, %v2653_v9, %v252_v63  ;;  %v578_v27 = vand.u32 8388607, %v571_v34  ;;  %v587_v60 = vshrl.u32 %v2033_v15, %v2235_v2 }
  0x95   : > { %v438_v22 = vor.u32 %v437_v31, %v436_v37  ;;  %v441_v20 = vshll.u32 %v440_v7, 23  ;;  %v257_v43 = vsel %vm250_vm5, %v253_v28, %v256_v35  ;;  %v593_v40 = vor.u32 %v592_v62, %v591_v0 }
  0x96   : > { %v530_v59 = vshll.u32 %v2673_v45, 30  ;;  %v2693_v8 = vsel %vm247_vm3, nan, %v257_v43  ;;  %vm351_vm7 = vweird.f32 %v2159_v4  ;;  %v596_v25 = vor.u32 %v595_v41, %v594_v16 }
  0x97   : > { %v442_v10 = vor.u32 4788187, %v441_v20  ;;  %v445_v1 = vcvt.s32.f32 %v438_v22  ;;  %1764 = vst [vmem:[%s2153_s25 + $0x30] sm:$0xff] %v2693_v8  ;;  %v590_v19 = vor.u32 %v589_v14, %v588_v54  ;;  %vm603_vm11 = vcmp.lt.s32.totalorder %v2382_v38, 1 }
  0x98   : > { %v2698_v58 = vsub.s32 %v527_v11, %v530_v59  ;;  %vm605_vm12 = vcmp.lt.s32.totalorder %v2382_v38, 3  ;;  %vm354_vm13 = vcmp.lt.s32.totalorder %v2643_v18, 2  ;;  %v579_v46 = vor.u32 8388608, %v578_v27 }
  0x99   : > { %v443_v2 = vand.u32 2147483647, %v442_v10  ;;  %v608_v49 = vsel %vm606_vm4, %v596_v25, 2102212464  ;;  %vm355_vm14 = vcmp.eq.s32.totalorder %v2643_v18, 0  ;;  %vm358_vm1 = vcmp.eq.s32.totalorder %v2643_v18, 2 }
  0x9a   : > { %v456_v37 = vadd.s32 3, %v2649_v53  ;;  %v533_v11 = vsub.s32 0, %v2698_v58  ;;  %vm604_vm5 = vcmp.lt.s32.totalorder %v2382_v38, 2  ;;  %v615_v0 = vsel %vm603_vm11, %v593_v40, %v596_v25 }
  0x9b   : > { %v446_v51 = vmul.f32 %v445_v1, %v443_v2  ;;  %v617_v42 = vsel %vm605_vm12, %v2422_v36, %v2476_v23  ;;  %v2716_v62 = vpop.eup %1939  ;;  %vm469_vm4 = vcmp.lt.s32.totalorder %v2168_v12, 0  ;;  %v607_v31 = vsel %vm603_vm11, %v587_v60, %v590_v19 }
  0x9c   : > { %v1729_v16 = vmin.u32 %v533_v11, %v2698_v58  ;;  %v609_v7 = vsel %vm605_vm12, %v593_v40, %v608_v49  ;;  %v611_v41 = vsel %vm603_vm11, %v590_v19, %v593_v40  ;;  %v2726_v35 = vpop.eup %1941  ;;  %v359_v54 = vxor.u32 2147483648, %v2716_v62 }
  0x9d   : > { %v447_v36 = vxor.u32 2147483648, %v446_v51  ;;  %v613_v23 = vsel %vm605_vm12, %v596_v25, %v2455_v52  ;;  %v619_v14 = vshll.u32 %v579_v46, 8  ;;  %v356_v28 = vxor.u32 2147483648, %v2726_v35 }
  0x9e   : > { %v523_v22 = vadd.s32 %v2605_v47, %v2602_v50  ;;  %v535_v20 = vclz %v1729_v16  ;;  %v618_v27 = vsel %vm604_vm5, %v615_v0, %v617_v42  ;;  %v360_v43 = vsel %vm358_vm1, %v359_v54, %v2726_v35 }
  0x9f   : > { %v448_v52 = vsel %vm365_vm2, %v447_v36, %v446_v51  ;;  %v553_v59 = vsub.s32 4, %v2673_v45  ;;  %v610_v60 = vsel %vm604_vm5, %v607_v31, %v609_v7  ;;  %v357_v50 = vsel %vm355_vm14, %v2716_v62, %v356_v28 }
  0xa0   : > { %v451_v47 = vsel %vm2624_vm0, %v2162_v5, %v448_v52  ;;  %v1730_v40 = vadd.s32 4294967294, %v535_v20  ;;  %v614_v10 = vsel %vm604_vm5, %v611_v41, %v613_v23  ;;  %v361_v1 = vsel %vm354_vm13, %v357_v50, %v360_v43 }
  0xa1   : > { %1943 = vcosq.f32 %v451_v47  ;;  %v2759_v25 = vmul.u32.u64.low %v619_v14, %v618_v27  ;;  %v2760_v19 = vmul.u32.u64.high %v619_v14, %v618_v27, %v2759_v25  ;;  %v2764_v2 = vsel %vm351_vm7, nan, %v361_v1 }
  0xa2   : > { %1945 = vsinq.f32 %v451_v47  ;;  %vm1731_vm2 = vcmp.lt.s32.totalorder %v1730_v40, 0  ;;  %v675_v30 = vand.u32 2147483647, %v2176_v26  ;;  %1765 = vst [vmem:[%s2153_s25 + $0x38] sm:$0xff] %v2764_v2  ;;  %v2769_v46 = vand.u32 3, %v456_v37 }
  0xa3   : > { %v538_v38 = vsel %vm1731_vm2, 0, %v1730_v40  ;;  %v2771_v49 = vmul.u32.u64.low %v619_v14, %v614_v10  ;;  %v2772_v18 = vmul.u32.u64.high %v619_v14, %v614_v10, %v2771_v49  ;;  %vm2776_vm0 = vcmp.le.f32.partialorder %v467_v24, 0.7853982 }
  0xa4   : > { %v539_v51 = vsub.s32 32, %v538_v38  ;;  %v540_v0 = vshll.u32 %v2698_v58, %v538_v38  ;;  %v543_v42 = vsub.s32 4294967266, %v538_v38  ;;  %v554_v16 = vsel %vm469_vm4, %v553_v59, %v2673_v45 }
  0xa5   : > { %v626_v37 = vmul.u32 %v619_v14, %v610_v60  ;;  %v2785_v31 = vadd.s32 %v2771_v49, %v2760_v19  ;;  %vm628_vm6 = vc.u32 %v2760_v19, %v2771_v49  ;;  %v682_v24 = vand.u32 8388607, %v675_v30 }
  0xa6   : > { %v541_v7 = vshrl.u32 %v523_v22, %v539_v51  ;;  %v544_v41 = vadd.s32 127, %v543_v42  ;;  %v692_v36 = vshll.u32 %v2033_v15, %v2270_v29  ;;  %vm459_vm8 = vcmp.eq.s32.totalorder %v2769_v46, 0 }
  0xa7   : > { %v629_v58 = vadd.s32 1, %v2772_v18  ;;  %v693_v45 = vshrl.u32 %v2034_v17, %v2280_v39  ;;  %v695_v23 = vshll.u32 %v2034_v17, %v2270_v29  ;;  %v696_v14 = vshrl.u32 %v2035_v32, %v2280_v39 }
  0xa8   : > { %vm458_vm9 = vcmp.lt.s32.totalorder %v2769_v46, 2  ;;  %v542_v22 = vor.u32 %v541_v7, %v540_v0  ;;  %v545_v20 = vshll.u32 %v544_v41, 23  ;;  %v698_v27 = vshll.u32 %v2035_v32, %v2270_v29 }
  0xa9   : > { %v699_v43 = vshrl.u32 %v2030_v48, %v2280_v39  ;;  %vm455_vm10 = vweird.f32 %v2162_v5  ;;  %v630_v52 = vsel %vm628_vm6, %v629_v58, %v2772_v18  ;;  %v694_v17 = vor.u32 %v693_v45, %v692_v36 }
  0xaa   : > { %v697_v59 = vor.u32 %v696_v14, %v695_v23  ;;  %vm707_vm11 = vcmp.lt.s32.totalorder %v2458_v56, 1  ;;  %v546_v60 = vor.u32 4788187, %v545_v20  ;;  %v549_v50 = vcvt.s32.f32 %v542_v22 }
  0xab   : > { %v631_v47 = vadd.s32 %v630_v52, %v626_v37  ;;  %v700_v40 = vor.u32 %v699_v43, %v698_v27  ;;  %v683_v10 = vor.u32 8388608, %v682_v24  ;;  %v691_v29 = vshrl.u32 %v2033_v15, %v2280_v39 }
  0xac   : > { %vm708_vm12 = vcmp.lt.s32.totalorder %v2458_v56, 2  ;;  %vm709_vm13 = vcmp.lt.s32.totalorder %v2458_v56, 3  ;;  %vm462_vm14 = vcmp.eq.s32.totalorder %v2769_v46, 2  ;;  %v547_v48 = vand.u32 2147483647, %v546_v60 }
  0xad   : > { %v2817_v32 = vsel %vm2776_vm0, 0, %v554_v16  ;;  %v632_v1 = vadd.s32 536870912, %v631_v47  ;;  %v712_v25 = vsel %vm710_vm15, %v700_v40, 2102212464  ;;  %v715_v19 = vsel %vm707_vm11, %v694_v17, %v697_v59 }
  0xae   : > { %v719_v15 = vsel %vm707_vm11, %v697_v59, %v700_v40  ;;  %v721_v39 = vsel %vm709_vm13, %v2585_v6, %v2619_v55  ;;  %v2829_v38 = vpop.eup %1943  ;;  %v550_v49 = vmul.f32 %v549_v50, %v547_v48  ;;  %v717_v51 = vsel %vm709_vm13, %v700_v40, %v2612_v61 }
  0xaf   : > { %v633_v18 = vshrl.u32 %v632_v1, 30  ;;  %v722_v0 = vsel %vm708_vm12, %v719_v15, %v721_v39  ;;  %v2836_v42 = vpop.eup %1945  ;;  %v463_v16 = vxor.u32 2147483648, %v2829_v38  ;;  %v560_v37 = vadd.s32 3, %v2817_v32 }
  0xb0   : > { %v711_v6 = vsel %vm707_vm11, %v691_v29, %v694_v17  ;;  %v723_v55 = vshll.u32 %v683_v10, 8  ;;  %v460_v7 = vxor.u32 2147483648, %v2836_v42  ;;  %v551_v41 = vxor.u32 2147483648, %v550_v49 }
  0xb1   : > { %v634_v24 = vshll.u32 %v633_v18, 30  ;;  %v713_v61 = vsel %vm709_vm13, %v697_v59, %v712_v25  ;;  %v464_v36 = vsel %vm462_vm14, %v463_v16, %v2836_v42  ;;  %v718_v58 = vsel %vm708_vm12, %v715_v19, %v717_v51 }
  0xb2   : > { %v2852_v45 = vmul.u32.u64.low %v723_v55, %v722_v0  ;;  %v2853_v23 = vmul.u32.u64.high %v723_v55, %v722_v0, %v2852_v45  ;;  %v461_v14 = vsel %vm459_vm8, %v2829_v38, %v460_v7  ;;  %v552_v22 = vsel %vm469_vm4, %v551_v41, %v550_v49 }
  0xb3   : > { %v2862_v20 = vsub.s32 %v631_v47, %v634_v24  ;;  %v872_v27 = vand.u32 3, %v2503_v33  ;;  %v1411_v43 = vmul.f32 2.0, %v2693_v8  ;;  %v465_v52 = vsel %vm458_vm9, %v461_v14, %v464_v36 }
  0xb4   : > { %v555_v17 = vsel %vm2776_vm0, %v2168_v12, %v552_v22  ;;  %v2873_v59 = vsel %vm455_vm10, nan, %v465_v52  ;;  %v2875_v60 = vand.u32 3, %v560_v37  ;;  %v714_v33 = vsel %vm708_vm12, %v711_v6, %v713_v61 }
  0xb5   : > { %1947 = vcosq.f32 %v555_v17  ;;  %v637_v50 = vsub.s32 0, %v2862_v20  ;;  %1766 = vst [vmem:[%s2153_s25 + $0x40] sm:$0xff] %v2873_v59  ;;  %v2882_v46 = vmul.u32.u64.low %v723_v55, %v718_v58  ;;  %v2883_v47 = vmul.u32.u64.high %v723_v55, %v718_v58, %v2882_v46 }
  0xb6   : > { %1949 = vsinq.f32 %v555_v17  ;;  %v657_v40 = vsub.s32 4, %v633_v18  ;;  %vm874_vm15 = vcmp.eq.s32.totalorder %v872_v27, 0  ;;  %vm877_vm1 = vcmp.eq.s32.totalorder %v872_v27, 2 }
  0xb7   : > { %v1733_v11 = vmin.u32 %v637_v50, %v2862_v20  ;;  %v2887_v10 = vadd.s32 %v2882_v46, %v2853_v23  ;;  %vm732_vm5 = vc.u32 %v2853_v23, %v2882_v46  ;;  %vm873_vm4 = vcmp.lt.s32.totalorder %v872_v27, 2 }
  0xb8   : > { %v876_v29 = vsel %vm874_vm15, %v2653_v9, %v252_v63  ;;  %v2894_v56 = vmul.f32 %v1411_v43, %v2693_v8  ;;  %vm573_vm2 = vcmp.lt.s32.totalorder %v2172_v13, 0  ;;  %v730_v1 = vmul.u32 %v723_v55, %v714_v33 }
  0xb9   : > { %v639_v48 = vclz %v1733_v11  ;;  %vm566_vm0 = vcmp.eq.s32.totalorder %v2875_v60, 2  ;;  %v733_v25 = vadd.s32 1, %v2883_v47  ;;  %v879_v19 = vsel %vm877_vm1, %v255_v57, %v2658_v21 }
  0xba   : > { %v975_v15 = vand.u32 3, %v2596_v44  ;;  %v1078_v63 = vand.u32 3, %v2649_v53  ;;  %v2905_v8 = vmul.f32 2.0, %v2764_v2  ;;  %vm563_vm6 = vcmp.eq.s32.totalorder %v2875_v60, 0 }
  0xbb   : > { %v1734_v39 = vadd.s32 4294967294, %v639_v48  ;;  %v658_v49 = vsel %vm573_vm2, %v657_v40, %v633_v18  ;;  %v880_v51 = vsel %vm873_vm4, %v876_v29, %v879_v19  ;;  %vm562_vm8 = vcmp.lt.s32.totalorder %v2875_v60, 2 }
  0xbc   : > { %v734_v9 = vsel %vm732_vm5, %v733_v25, %v2883_v47  ;;  %v881_v44 = vsel %vm247_vm3, nan, %v880_v51  ;;  %vm977_vm9 = vcmp.eq.s32.totalorder %v975_v15, 0  ;;  %v2917_v53 = vand.u32 3, %v2817_v32 }
  0xbd   : > { %vm559_vm11 = vweird.f32 %v2168_v12  ;;  %vm1735_vm12 = vcmp.lt.s32.totalorder %v1734_v39, 0  ;;  %v735_v21 = vadd.s32 %v734_v9, %v730_v1  ;;  %1770 = vst [vmem:[%s2153_s25 + $0x60] sm:$0xff] %v881_v44  ;;  %v2921_v57 = vmul.f32 %v1411_v43, %v881_v44 }
  0xbe   : > { %vm976_vm13 = vcmp.lt.s32.totalorder %v975_v15, 2  ;;  %vm2925_vm14 = vcmp.le.f32.partialorder %v571_v34, 0.7853982  ;;  %v642_v3 = vsel %vm1735_vm12, 0, %v1734_v39  ;;  %v979_v32 = vsel %vm977_vm9, %v2716_v62, %v356_v28 }
  0xbf   : > { %vm980_vm3 = vcmp.eq.s32.totalorder %v975_v15, 2  ;;  %vm1080_vm15 = vcmp.eq.s32.totalorder %v1078_v63, 0  ;;  %v643_v0 = vsub.s32 32, %v642_v3  ;;  %v644_v37 = vshll.u32 %v2862_v20, %v642_v3  ;;  %1776 = vst [vmem:[%s2153_s25 + $0x90] sm:$0xff] %v2921_v57 }
  0xc0   : > { %v647_v6 = vsub.s32 4294967266, %v642_v3  ;;  %v736_v55 = vadd.s32 536870912, %v735_v21  ;;  %v982_v34 = vsel %vm980_vm3, %v359_v54, %v2726_v35  ;;  %vm1079_vm1 = vcmp.lt.s32.totalorder %v1078_v63, 2 }
  0xc1   : > { %v1082_v41 = vsel %vm1080_vm15, %v2829_v38, %v460_v7  ;;  %vm1083_vm5 = vcmp.eq.s32.totalorder %v1078_v63, 2  ;;  %v645_v28 = vshrl.u32 %v2785_v31, %v643_v0  ;;  %v983_v36 = vsel %vm976_vm13, %v979_v32, %v982_v34 }
  0xc2   : > { %v648_v24 = vadd.s32 127, %v647_v6  ;;  %v737_v61 = vshrl.u32 %v736_v55, 30  ;;  %v1948_v58 = vpop.eup %1947  ;;  %v1413_v45 = vmul.f32 2.0, %v2873_v59  ;;  %v984_v62 = vsel %vm351_vm7, nan, %v983_v36 }
  0xc3   : > { %v1085_v35 = vsel %vm1083_vm5, %v463_v16, %v2836_v42  ;;  %vm1183_vm4 = vcmp.eq.s32.totalorder %v2917_v53, 0  ;;  %v1950_v54 = vpop.eup %1949  ;;  %v567_v7 = vxor.u32 2147483648, %v1948_v58  ;;  %v646_v31 = vor.u32 %v645_v28, %v644_v37  ;;  %1771 = vst [vmem:[%s2153_s25 + $0x68] sm:$0xff] %v984_v62 }
  0xc4   : > { %v649_v23 = vshll.u32 %v648_v24, 23  ;;  %v738_v14 = vshll.u32 %v737_v61, 30  ;;  %v564_v22 = vxor.u32 2147483648, %v1950_v54  ;;  %v2952_v20 = vmul.f32 %v2905_v8, %v984_v62 }
  0xc5   : > { %v1086_v4 = vsel %vm1079_vm1, %v1082_v41, %v1085_v35  ;;  %vm1186_vm7 = vcmp.eq.s32.totalorder %v2917_v53, 2  ;;  %v568_v38 = vsel %vm566_vm0, %v567_v7, %v1950_v54  ;;  %v653_v16 = vcvt.s32.f32 %v646_v31 }
  0xc6   : > { %v650_v42 = vor.u32 4788187, %v649_v23  ;;  %v2958_v27 = vsub.s32 %v735_v21, %v738_v14  ;;  %v565_v43 = vsel %vm563_vm6, %v1948_v58, %v564_v22  ;;  %1777 = vst [vmem:[%s2153_s25 + $0x98] sm:$0xff] %v2952_v20  ;;  %v1087_v52 = vsel %vm455_vm10, nan, %v1086_v4 }
  0xc7   : > { %vm1182_vm9 = vcmp.lt.s32.totalorder %v2917_v53, 2  ;;  %v1185_v17 = vsel %vm1183_vm4, %v1948_v58, %v564_v22  ;;  %v569_v50 = vsel %vm562_vm8, %v565_v43, %v568_v38  ;;  %v660_v46 = vsel %vm2925_vm14, 0, %v658_v49  ;;  %1772 = vst [vmem:[%s2153_s25 + $0x70] sm:$0xff] %v1087_v52 }
  0xc8   : > { %v651_v33 = vand.u32 2147483647, %v650_v42  ;;  %v741_v47 = vsub.s32 0, %v2958_v27  ;;  %v570_v5 = vsel %vm559_vm11, nan, %v569_v50  ;;  %v761_v11 = vsub.s32 4, %v737_v61 }
  0xc9   : > { %v1419_v40 = vmul.f32 %v1413_v45, %v1087_v52  ;;  %v1188_v29 = vsel %vm1186_vm7, %v567_v7, %v1950_v54  ;;  %1767 = vst [vmem:[%s2153_s25 + $0x48] sm:$0xff] %v570_v5  ;;  %v1414_v60 = vmul.f32 2.0, %v570_v5  ;;  %v1424_v19 = vmul.f32 %v2905_v8, %v2764_v2 }
  0xca   : > { %v654_v48 = vmul.f32 %v653_v16, %v651_v33  ;;  %v1737_v1 = vmin.u32 %v741_v47, %v2958_v27  ;;  %v1189_v25 = vsel %vm1182_vm9, %v1185_v17, %v1188_v29  ;;  %v1425_v15 = vmul.f32 %v1413_v45, %v2873_v59 }
  0xcb   : > { %v664_v63 = vadd.s32 3, %v660_v46  ;;  %1778 = vst [vmem:[%s2153_s25 + $0xa0] sm:$0xff] %v1419_v40  ;;  %v1190_v39 = vsel %vm559_vm11, nan, %v1189_v25  ;;  %v1426_v49 = vmul.f32 %v1414_v60, %v570_v5  ;;  %vm2990_vm10 = vcmp.le.f32.partialorder %v675_v30, 0.7853982 }
  0xcc   : > { %v655_v51 = vxor.u32 2147483648, %v654_v48  ;;  %v743_v9 = vclz %v1737_v1  ;;  %1773 = vst [vmem:[%s2153_s25 + $0x78] sm:$0xff] %v1190_v39  ;;  %v1420_v44 = vmul.f32 %v1414_v60, %v1190_v39  ;;  %vm677_vm0 = vcmp.lt.s32.totalorder %v2176_v26, 0 }
  0xcd   : > { %v762_v12 = vsel %vm677_vm0, %v761_v11, %v737_v61  ;;  %v1429_v8 = vsub.f32 1.0, %v2894_v56  ;;  %v1430_v21 = vsub.f32 1.0, %v1424_v19  ;;  %v1431_v3 = vsub.f32 1.0, %v1425_v15 }
  0xce   : > { %v656_v2 = vsel %vm573_vm2, %v655_v51, %v654_v48  ;;  %v1738_v59 = vadd.s32 4294967294, %v743_v9  ;;  %1779 = vst [vmem:[%s2153_s25 + $0xa8] sm:$0xff] %v1420_v44  ;;  %v1432_v32 = vsub.f32 1.0, %v1426_v49  ;;  %v3004_v0 = vand.u32 3, %v664_v63 }
  0xcf   : > { %v659_v30 = vsel %vm2925_vm14, %v2172_v13, %v656_v2  ;;  %v3006_v37 = vand.u32 3, %v660_v46  ;;  %1782 = vst [vmem:[%s2153_s25 + $0xc0] sm:$0xff] %v1429_v8  ;;  %v3011_v55 = vsel %vm2990_vm10, 0, %v762_v12  ;;  %1783 = vst [vmem:[%s2153_s25 + $0xc8] sm:$0xff] %v1430_v21  ;;  %v1449_v56 = vmul.f32 2.0, %v2921_v57 }
  0xd0   : > { %1951 = vcosq.f32 %v659_v30  ;;  %vm1739_vm2 = vcmp.lt.s32.totalorder %v1738_v59, 0  ;;  %1784 = vst [vmem:[%s2153_s25 + $0xd0] sm:$0xff] %v1431_v3  ;;  %1785 = vst [vmem:[%s2153_s25 + $0xd8] sm:$0xff] %v1432_v32  ;;  %v1450_v28 = vmul.f32 2.0, %v2952_v20  ;;  %v1451_v61 = vmul.f32 2.0, %v1419_v40 }
  0xd1   : > { %1953 = vsinq.f32 %v659_v30  ;;  %v746_v6 = vsel %vm1739_vm2, 0, %v1738_v59  ;;  %v1455_v24 = vmul.f32 %v1449_v56, %v1429_v8  ;;  %v1452_v36 = vmul.f32 2.0, %v1420_v44 }
  0xd2   : > { %v747_v18 = vsub.s32 32, %v746_v6  ;;  %v748_v34 = vshll.u32 %v2958_v27, %v746_v6  ;;  %v751_v41 = vsub.s32 4294967266, %v746_v6  ;;  %v1461_v58 = vmul.f32 %v1449_v56, %v2921_v57 }
  0xd3   : > { %v1456_v35 = vmul.f32 %v1450_v28, %v1430_v21  ;;  %v1462_v54 = vmul.f32 %v1450_v28, %v2952_v20  ;;  %vm670_vm6 = vcmp.eq.s32.totalorder %v3004_v0, 2  ;;  %vm1289_vm8 = vcmp.eq.s32.totalorder %v3006_v37, 2  ;;  %1788 = vst [vmem:[%s2153_s25 + $0xf0] sm:$0xff] %v1455_v24 }
  0xd4   : > { %v749_v45 = vshrl.u32 %v2887_v10, %v747_v18  ;;  %v752_v62 = vadd.s32 127, %v751_v41  ;;  %v1457_v7 = vmul.f32 %v1451_v61, %v1431_v3  ;;  %v1458_v31 = vmul.f32 %v1452_v36, %v1432_v32 }
  0xd5   : > { %v1467_v23 = vsub.f32 1.0, %v1461_v58  ;;  %v1463_v14 = vmul.f32 %v1451_v61, %v1419_v40  ;;  %vm667_vm11 = vcmp.eq.s32.totalorder %v3004_v0, 0  ;;  %vm1286_vm12 = vcmp.eq.s32.totalorder %v3006_v37, 0  ;;  %1789 = vst [vmem:[%s2153_s25 + $0xf8] sm:$0xff] %v1456_v35 }
  0xd6   : > { %v750_v57 = vor.u32 %v749_v45, %v748_v34  ;;  %v753_v10 = vshll.u32 %v752_v62, 23  ;;  %v1468_v22 = vsub.f32 1.0, %v1462_v54  ;;  %v1464_v20 = vmul.f32 %v1452_v36, %v1420_v44  ;;  %1790 = vst [vmem:[%s2153_s25 + $0x100] sm:$0xff] %v1457_v7  ;;  %1791 = vst [vmem:[%s2153_s25 + $0x108] sm:$0xff] %v1458_v31 }
  0xd7   : > { %vm666_vm13 = vcmp.lt.s32.totalorder %v3004_v0, 2  ;;  %vm1285_vm14 = vcmp.lt.s32.totalorder %v3006_v37, 2  ;;  %1794 = vst [vmem:[%s2153_s25 + $0x120] sm:$0xff] %v1467_v23  ;;  %v1469_v4 = vsub.f32 1.0, %v1463_v14  ;;  %v1487_v38 = vmul.f32 2.0, %v1455_v24 }
  0xd8   : > { %v1488_v42 = vmul.f32 2.0, %v1456_v35  ;;  %v1489_v16 = vmul.f32 2.0, %v1457_v7  ;;  %vm663_vm3 = vweird.f32 %v2172_v13  ;;  %v754_v27 = vor.u32 4788187, %v753_v10  ;;  %1795 = vst [vmem:[%s2153_s25 + $0x128] sm:$0xff] %v1468_v22 }
  0xd9   : > { %v757_v43 = vcvt.s32.f32 %v750_v57  ;;  %v1470_v52 = vsub.f32 1.0, %v1464_v20  ;;  %v1490_v17 = vmul.f32 2.0, %v1458_v31  ;;  %1796 = vst [vmem:[%s2153_s25 + $0x130] sm:$0xff] %v1469_v4  ;;  %v1493_v50 = vmul.f32 %v1487_v38, %v1467_v23 }
  0xda   : > { %v1494_v33 = vmul.f32 %v1488_v42, %v1468_v22  ;;  %v1495_v46 = vmul.f32 %v1489_v16, %v1469_v4  ;;  %v1499_v47 = vmul.f32 %v1487_v38, %v1455_v24  ;;  %v755_v5 = vand.u32 2147483647, %v754_v27 }
  0xdb   : > { %1797 = vst [vmem:[%s2153_s25 + $0x138] sm:$0xff] %v1470_v52  ;;  %v1496_v11 = vmul.f32 %v1490_v17, %v1470_v52  ;;  %v1500_v40 = vmul.f32 %v1488_v42, %v1456_v35  ;;  %v1501_v29 = vmul.f32 %v1489_v16, %v1457_v7  ;;  %1800 = vst [vmem:[%s2153_s25 + $0x150] sm:$0xff] %v1493_v50  ;;  %v1525_v1 = vmul.f32 2.0, %v1493_v50 }
  0xdc   : > { %1801 = vst [vmem:[%s2153_s25 + $0x158] sm:$0xff] %v1494_v33  ;;  %1802 = vst [vmem:[%s2153_s25 + $0x160] sm:$0xff] %v1495_v46  ;;  %v1505_v60 = vsub.f32 1.0, %v1499_v47  ;;  %v1502_v48 = vmul.f32 %v1490_v17, %v1458_v31  ;;  %v1526_v25 = vmul.f32 2.0, %v1494_v33  ;;  %v758_v19 = vmul.f32 %v757_v43, %v755_v5 }
  0xdd   : > { %1803 = vst [vmem:[%s2153_s25 + $0x168] sm:$0xff] %v1496_v11  ;;  %v1506_v15 = vsub.f32 1.0, %v1500_v40  ;;  %v1507_v63 = vsub.f32 1.0, %v1501_v29  ;;  %v1527_v39 = vmul.f32 2.0, %v1495_v46  ;;  %v1952_v49 = vpop.eup %1951  ;;  %v1528_v44 = vmul.f32 2.0, %v1496_v11 }
  0xde   : > { %1806 = vst [vmem:[%s2153_s25 + $0x180] sm:$0xff] %v1505_v60  ;;  %v1508_v51 = vsub.f32 1.0, %v1502_v48  ;;  %v1531_v9 = vmul.f32 %v1525_v1, %v1505_v60  ;;  %v1537_v2 = vmul.f32 %v1525_v1, %v1493_v50  ;;  %v1954_v59 = vpop.eup %1953  ;;  %v671_v12 = vxor.u32 2147483648, %v1952_v49 }
  0xdf   : > { %v759_v8 = vxor.u32 2147483648, %v758_v19  ;;  %1807 = vst [vmem:[%s2153_s25 + $0x188] sm:$0xff] %v1506_v15  ;;  %1808 = vst [vmem:[%s2153_s25 + $0x190] sm:$0xff] %v1507_v63  ;;  %v1532_v30 = vmul.f32 %v1526_v25, %v1506_v15  ;;  %v1533_v21 = vmul.f32 %v1527_v39, %v1507_v63  ;;  %v668_v3 = vxor.u32 2147483648, %v1954_v59 }
  0xe0   : > { %1809 = vst [vmem:[%s2153_s25 + $0x198] sm:$0xff] %v1508_v51  ;;  %1812 = vst [vmem:[%s2153_s25 + $0x1b0] sm:$0xff] %v1531_v9  ;;  %v1534_v32 = vmul.f32 %v1528_v44, %v1508_v51  ;;  %v1543_v6 = vsub.f32 1.0, %v1537_v2  ;;  %v1538_v56 = vmul.f32 %v1526_v25, %v1494_v33  ;;  %v672_v18 = vsel %vm670_vm6, %v671_v12, %v1954_v59 }
  0xe1   : > { %v760_v34 = vsel %vm677_vm0, %v759_v8, %v758_v19  ;;  %v1291_v41 = vsel %vm1289_vm8, %v671_v12, %v1954_v59  ;;  %1813 = vst [vmem:[%s2153_s25 + $0x1b8] sm:$0xff] %v1532_v30  ;;  %1814 = vst [vmem:[%s2153_s25 + $0x1c0] sm:$0xff] %v1533_v21  ;;  %v1539_v28 = vmul.f32 %v1527_v39, %v1495_v46  ;;  %v1563_v0 = vmul.f32 2.0, %v1531_v9 }
  0xe2   : > { %v669_v24 = vsel %vm667_vm11, %v1952_v49, %v668_v3  ;;  %v763_v61 = vsel %vm2990_vm10, %v2176_v26, %v760_v34  ;;  %v1288_v36 = vsel %vm1286_vm12, %v1952_v49, %v668_v3  ;;  %1815 = vst [vmem:[%s2153_s25 + $0x1c8] sm:$0xff] %v1534_v32  ;;  %1818 = vst [vmem:[%s2153_s25 + $0x1e0] sm:$0xff] %v1543_v6  ;;  %v1544_v58 = vsub.f32 1.0, %v1538_v56 }
  0xe3   : > { %v673_v45 = vsel %vm666_vm13, %v669_v24, %v672_v18  ;;  %1955 = vcosq.f32 %v763_v61  ;;  %v1292_v62 = vsel %vm1285_vm14, %v1288_v36, %v1291_v41  ;;  %v1545_v35 = vsub.f32 1.0, %v1539_v28 }
  0xe4   : > { %v674_v53 = vsel %vm663_vm3, nan, %v673_v45  ;;  %1957 = vsinq.f32 %v763_v61  ;;  %v1293_v54 = vsel %vm663_vm3, nan, %v1292_v62  ;;  %1819 = vst [vmem:[%s2153_s25 + $0x1e8] sm:$0xff] %v1544_v58  ;;  %v1540_v7 = vmul.f32 %v1528_v44, %v1496_v11 }
  0xe5   : > { %1768 = vst [vmem:[%s2153_s25 + $0x50] sm:$0xff] %v674_v53  ;;  %v1415_v31 = vmul.f32 2.0, %v674_v53  ;;  %1774 = vst [vmem:[%s2153_s25 + $0x80] sm:$0xff] %v1293_v54  ;;  %v1564_v23 = vmul.f32 2.0, %v1532_v30  ;;  %v1565_v37 = vmul.f32 2.0, %v1533_v21  ;;  %v768_v14 = vadd.s32 3, %v3011_v55 }
  0xe6   : > { %1820 = vst [vmem:[%s2153_s25 + $0x1f0] sm:$0xff] %v1545_v35  ;;  %v1546_v57 = vsub.f32 1.0, %v1540_v7  ;;  %v1566_v10 = vmul.f32 2.0, %v1534_v32  ;;  %v1569_v20 = vmul.f32 %v1563_v0, %v1543_v6  ;;  %v1575_v16 = vmul.f32 %v1563_v0, %v1531_v9 }
  0xe7   : > { %v1427_v22 = vmul.f32 %v1415_v31, %v674_v53  ;;  %v1421_v13 = vmul.f32 %v1415_v31, %v1293_v54  ;;  %v1570_v4 = vmul.f32 %v1564_v23, %v1544_v58  ;;  %v1571_v38 = vmul.f32 %v1565_v37, %v1545_v35 }
  0xe8   : > { %1821 = vst [vmem:[%s2153_s25 + $0x1f8] sm:$0xff] %v1546_v57  ;;  %v1572_v42 = vmul.f32 %v1566_v10, %v1546_v57  ;;  %v1576_v27 = vmul.f32 %v1564_v23, %v1532_v30  ;;  %1824 = vst [vmem:[%s2153_s25 + $0x210] sm:$0xff] %v1569_v20  ;;  %v1577_v17 = vmul.f32 %v1565_v37, %v1533_v21  ;;  %v1581_v33 = vsub.f32 1.0, %v1575_v16 }
  0xe9   : > { %1780 = vst [vmem:[%s2153_s25 + $0xb0] sm:$0xff] %v1421_v13  ;;  %v1433_v43 = vsub.f32 1.0, %v1427_v22  ;;  %v1453_v52 = vmul.f32 2.0, %v1421_v13  ;;  %1825 = vst [vmem:[%s2153_s25 + $0x218] sm:$0xff] %v1570_v4  ;;  %v1578_v50 = vmul.f32 %v1566_v10, %v1534_v32  ;;  %v769_v29 = vand.u32 3, %v768_v14 }
  0xea   : > { %1826 = vst [vmem:[%s2153_s25 + $0x220] sm:$0xff] %v1571_v38  ;;  %1827 = vst [vmem:[%s2153_s25 + $0x228] sm:$0xff] %v1572_v42  ;;  %v1582_v46 = vsub.f32 1.0, %v1576_v27  ;;  %v1583_v11 = vsub.f32 1.0, %v1577_v17  ;;  %v1387_v60 = vand.u32 3, %v3011_v55  ;;  %vm767_vm7 = vweird.f32 %v2176_v26 }
  0xeb   : > { %1786 = vst [vmem:[%s2153_s25 + $0xe0] sm:$0xff] %v1433_v43  ;;  %v1459_v47 = vmul.f32 %v1453_v52, %v1433_v43  ;;  %v1465_v5 = vmul.f32 %v1453_v52, %v1421_v13  ;;  %v1584_v40 = vsub.f32 1.0, %v1578_v50  ;;  %1830 = vst [vmem:[%s2153_s25 + $0x240] sm:$0xff] %v1581_v33  ;;  %vm771_vm15 = vcmp.eq.s32.totalorder %v769_v29, 0 }
  0xec   : > { %1831 = vst [vmem:[%s2153_s25 + $0x248] sm:$0xff] %v1582_v46  ;;  %1832 = vst [vmem:[%s2153_s25 + $0x250] sm:$0xff] %v1583_v11  ;;  %vm774_vm1 = vcmp.eq.s32.totalorder %v769_v29, 2  ;;  %vm1392_vm5 = vcmp.eq.s32.totalorder %v1387_v60, 2  ;;  %vm1389_vm4 = vcmp.eq.s32.totalorder %v1387_v60, 0  ;;  %vm770_vm9 = vcmp.lt.s32.totalorder %v769_v29, 2 }
  0xed   : > { %1792 = vst [vmem:[%s2153_s25 + $0x110] sm:$0xff] %v1459_v47  ;;  %v1471_v48 = vsub.f32 1.0, %v1465_v5  ;;  %v1491_v1 = vmul.f32 2.0, %v1459_v47  ;;  %1833 = vst [vmem:[%s2153_s25 + $0x258] sm:$0xff] %v1584_v40  ;;  %vm1388_vm10 = vcmp.lt.s32.totalorder %v1387_v60, 2 }
  0xef   : > { %1798 = vst [vmem:[%s2153_s25 + $0x140] sm:$0xff] %v1471_v48  ;;  %v1497_v25 = vmul.f32 %v1491_v1, %v1471_v48  ;;  %v1503_v19 = vmul.f32 %v1491_v1, %v1459_v47 }
  0xf0   : > { %v1956_v15 = vpop.eup %1955 }
  0xf1   : > { %v1958_v63 = vpop.eup %1957  ;;  %v775_v39 = vxor.u32 2147483648, %v1956_v15  ;;  %1804 = vst [vmem:[%s2153_s25 + $0x170] sm:$0xff] %v1497_v25  ;;  %v1509_v55 = vsub.f32 1.0, %v1503_v19  ;;  %v1529_v49 = vmul.f32 2.0, %v1497_v25 }
  0xf2   : > { %v772_v51 = vxor.u32 2147483648, %v1958_v63 }
  0xf3   : > { %v776_v9 = vsel %vm774_vm1, %v775_v39, %v1958_v63  ;;  %v1394_v44 = vsel %vm1392_vm5, %v775_v39, %v1958_v63  ;;  %1810 = vst [vmem:[%s2153_s25 + $0x1a0] sm:$0xff] %v1509_v55  ;;  %v1535_v2 = vmul.f32 %v1529_v49, %v1509_v55  ;;  %v1541_v59 = vmul.f32 %v1529_v49, %v1497_v25 }
  0xf4   : > { %v773_v12 = vsel %vm771_vm15, %v1956_v15, %v772_v51  ;;  %v1391_v8 = vsel %vm1389_vm4, %v1956_v15, %v772_v51 }
  0xf5   : > { %v777_v30 = vsel %vm770_vm9, %v773_v12, %v776_v9  ;;  %v1395_v21 = vsel %vm1388_vm10, %v1391_v8, %v1394_v44  ;;  %1816 = vst [vmem:[%s2153_s25 + $0x1d0] sm:$0xff] %v1535_v2  ;;  %v1547_v3 = vsub.f32 1.0, %v1541_v59  ;;  %v1567_v32 = vmul.f32 2.0, %v1535_v2 }
  0xf6   : > { %v778_v6 = vsel %vm767_vm7, nan, %v777_v30  ;;  %v1396_v56 = vsel %vm767_vm7, nan, %v1395_v21 }
  0xf7   : > { %1769 = vst [vmem:[%s2153_s25 + $0x58] sm:$0xff] %v778_v6  ;;  %v1416_v18 = vmul.f32 2.0, %v778_v6  ;;  %1775 = vst [vmem:[%s2153_s25 + $0x88] sm:$0xff] %v1396_v56  ;;  %v1573_v34 = vmul.f32 %v1567_v32, %v1547_v3  ;;  %v1579_v41 = vmul.f32 %v1567_v32, %v1535_v2 }
  0xf8   : > { %1822 = vst [vmem:[%s2153_s25 + $0x200] sm:$0xff] %v1547_v3 }
  0xf9   : > { %v1428_v28 = vmul.f32 %v1416_v18, %v778_v6  ;;  %v1422_v24 = vmul.f32 %v1416_v18, %v1396_v56  ;;  %1828 = vst [vmem:[%s2153_s25 + $0x230] sm:$0xff] %v1573_v34  ;;  %v1585_v61 = vsub.f32 1.0, %v1579_v41 }
  0xfb   : > { %1781 = vst [vmem:[%s2153_s25 + $0xb8] sm:$0xff] %v1422_v24  ;;  %v1434_v36 = vsub.f32 1.0, %v1428_v28  ;;  %v1454_v58 = vmul.f32 2.0, %v1422_v24  ;;  %1834 = vst [vmem:[%s2153_s25 + $0x260] sm:$0xff] %v1585_v61 }
  0xfd   : > { %1787 = vst [vmem:[%s2153_s25 + $0xe8] sm:$0xff] %v1434_v36  ;;  %v1460_v26 = vmul.f32 %v1454_v58, %v1434_v36  ;;  %v1466_v45 = vmul.f32 %v1454_v58, %v1422_v24 }
  0xff   : > { %1793 = vst [vmem:[%s2153_s25 + $0x118] sm:$0xff] %v1460_v26  ;;  %v1472_v62 = vsub.f32 1.0, %v1466_v45  ;;  %v1492_v35 = vmul.f32 2.0, %v1460_v26 }
 0x101   : > { %1799 = vst [vmem:[%s2153_s25 + $0x148] sm:$0xff] %v1472_v62  ;;  %v1498_v53 = vmul.f32 %v1492_v35, %v1472_v62  ;;  %v1504_v54 = vmul.f32 %v1492_v35, %v1460_v26 }
 0x103   : > { %1805 = vst [vmem:[%s2153_s25 + $0x178] sm:$0xff] %v1498_v53  ;;  %v1510_v7 = vsub.f32 1.0, %v1504_v54  ;;  %v1530_v31 = vmul.f32 2.0, %v1498_v53 }
 0x105   : > { %1811 = vst [vmem:[%s2153_s25 + $0x1a8] sm:$0xff] %v1510_v7  ;;  %v1536_v0 = vmul.f32 %v1530_v31, %v1510_v7  ;;  %v1542_v23 = vmul.f32 %v1530_v31, %v1498_v53 }
 0x107   : > { %1817 = vst [vmem:[%s2153_s25 + $0x1d8] sm:$0xff] %v1536_v0  ;;  %v1548_v37 = vsub.f32 1.0, %v1542_v23  ;;  %v1568_v14 = vmul.f32 2.0, %v1536_v0 }
 0x109   : > { %1823 = vst [vmem:[%s2153_s25 + $0x208] sm:$0xff] %v1548_v37  ;;  %v1574_v57 = vmul.f32 %v1568_v14, %v1548_v37  ;;  %v1580_v10 = vmul.f32 %v1568_v14, %v1536_v0 }
 0x10b   : > { %1829 = vst [vmem:[%s2153_s25 + $0x238] sm:$0xff] %v1574_v57  ;;  %v1586_v22 = vsub.f32 1.0, %v1580_v10 }
 0x10d   : > { %1835 = vst [vmem:[%s2153_s25 + $0x268] sm:$0xff] %v1586_v22 }
 0x10e   : > { %s1840_s27 = smul.u32 768, %s2074_s10  ;;  %s1625_s28 = sshll.u32 %s2153_s25, 4  ;;  %s1626_s28 = int_to_ptr.vmem [resolvable:$true] %s1625_s28 }
 0x10f   : > { %s2036_s4 = smov 768   ;;  %p3173_p11 = scmp.ne.s32.totalorder %s3157_s17, 0 }
 0x110   : > { %s1614_s3 = scalar_lea.hbm %s3153_s1, %s1840_s27  ;;  %s2037_s5 = smov 1536  }
 0x111   : > { %1870 = sst [smem:[#allocation7]] (%p3173_p11), %s2036_s4  ;;  %s2038_s11 = smov 6  }
 0x112   : > { %1871 = sst [smem:[#allocation7 + $0x1]] (%p3173_p11), %s2037_s5  ;;  %s2039_s13 = smov 128  }
 0x113   : > { %1872 = sst [smem:[#allocation7 + $0x2]] (%p3173_p11), %s2038_s11  ;;  %s2040_s10 = smov 8  }
 0x114   : > { %1873 = sst [smem:[#allocation7 + $0x3]] (%p3173_p11), %s2039_s13  ;;  %s2041_s14 = smov 131072  }
 0x115   : > { %1874 = sst [smem:[#allocation7 + $0x4]] (%p3173_p11), %s2039_s13  ;;  %s2042_s19 = smov 0  }
 0x116   : > { %1875 = sst [smem:[#allocation7 + $0x5]] (%p3173_p11), %s2040_s10 }
 0x117   : > { %1876 = dma.general (%p3173_p11), %s1626_s28, 9984, %s1614_s3, %s1602_s16, %s2041_s14, [#allocation7], %s2042_s19, 0  }
 0x118 PF: > { %s1653_s20 = sand.u32 1, %s2013_s6   ;;  %p3174_p12 = scmp.ne.s32.totalorder %s3158_s18, 0 }
 0x119   : > { %p3175_p13 = scmp.ge.s32.totalorder %s2025_s9, 2  ;;  %s1654_s21 = scalar_lea.sflag [#allocation4], %s1653_s20 }
 0x11b   : > { %p1883_p4 = pnand %p3175_p13, %p3174_p12 }
 0x11d   : > { %p1884_p5 = pneg %p1883_p4 }
 0x11f   : > { %2008 = dma.done.wait (%p1884_p5), %s1654_s21, 9984  }
 0x120   : > { %2010 = vsyncadd (%p1884_p5), %s1654_s21, 4294957312  ;;  %p14_p7 = scmp.ge.s32.totalorder %s2078_s12, 4   ;;  %s3176_s6 = smov %s2017_s7 }
 0x121   : > { %s3177_s7 = smov %s2021_s8  ;;  %s3178_s8 = smov %s2090_s15 }
 0x122   : > { %s3179_s9 = smov %s2078_s12  ;;  %16 = sbr.rel (!%p14_p7) target bundleno = 5 (0x5), region = 86 }
 0x127   :  { %1659 = vsyncpa [#allocation3], 1 }
 0x128   :  { %1661 = vsyncpa [#allocation3 + $0x1], 1 }
 0x129   :  { %1662 = vsyncpa [#allocation4], 1 }
 0x12a   :  { %1664 = vsyncpa [#allocation4 + $0x1], 1 }

</bundles_post_ra>
